<compile_context>
chip_gen: v7x
topology: tpu7x:2x2x1
jax: 0.10.0
libtpu: 0.0.40
codegen_flags: <defaults>
</compile_context>

<pallas_src>
import numpy as np
import jax
import jax.numpy as jnp
from jax.experimental import pallas as pl
from jax.experimental.pallas import tpu as pltpu

B = 2          # real batch
BP = 8         # batch padded to a full sublane tile
T = 8          # sequence length (max(lens) must equal T, as the module assumes)
DEMB = 32      # stacked embedding length
H = 32         # lstm_dim
E = 2 * H      # bi-LSTM width == attention embed_dim
NH = 2         # attn_heads
DH = E // NH   # head dim
NTAGS = 8      # n_tags
VOCAB = 50
NEG = -1e30    # stand-in for the -inf key-padding mask
TB = T * BP    # flattened (time, padded-batch) rows

# weight-slab row offsets (lane width = 8H = 256)
W_WIH = 0                  # rows [0, 64)   : fused input-proj weight (2*DEMB, 8H)
W_WHH = 2 * DEMB           # rows [64, 128) : block-diag hidden weight (2H, 8H)
W_QKV = W_WHH + 2 * H      # rows [128, 192): QKV weight (E, 3E) zero-padded to 256
W_W2 = W_QKV + E           # rows [192, 256): fused out_proj@out weight (E, NTAGS)
W_BIH = W_W2 + E           # row 256        : lstm bias (8H,)
W_BQKV = W_BIH + 1         # row 257        : QKV bias (3E,) padded
W_B2 = W_BQKV + 1          # row 258        : fused output bias (NTAGS,) padded
W_ROWS = 264               # padded to a multiple of 8 sublanes


def _sigmoid(x):
    # exact, overflow-free sigmoid on the EUP (tanh), no divides on the serial path
    return 0.5 * (jnp.tanh(0.5 * x) + 1.0)


def _kernel(d_ref, w_ref, out_ref, enc_ref):
    # ---- static, tile-aligned slices of the two operand slabs ----------------
    embcat = d_ref[0:TB, :]                       # (64, 2*DEMB)  [emb(t) | emb(T-1-t)]
    attn_mask = d_ref[2 * TB:3 * TB, :]           # (64, 64) additive mask

    wih = w_ref[W_WIH:W_WIH + 2 * DEMB, :]        # (64, 8H)
    whh = w_ref[W_WHH:W_WHH + 2 * H, :]           # (64, 8H) block-diagonal
    wqkv = w_ref[W_QKV:W_QKV + E, :]              # (64, 256) = [Wq|Wk|Wv|0], scale folded
    bih = w_ref[W_BIH:W_BIH + 1, :]               # (1, 8H)
    bqkv = w_ref[W_BQKV:W_BQKV + 1, :]            # (1, 256)
    b2 = w_ref[W_B2:W_B2 + 1, 0:NTAGS]            # (1, NTAGS)

    # ---- hoisted LSTM input projection: one (64,64)@(64,256) MXU matmul ------
    xproj = jnp.dot(embcat, wih, preferred_element_type=jnp.float32) + bih   # (64, 8H)

    # ---- fused fwd+bwd recurrence, fully unrolled at trace time (T=8) --------
    # pack_padded_sequence semantics via the lane-dense validity mask; padded
    # positions emit zeros (pad_packed_sequence).
    hcat = jnp.zeros((BP, 2 * H), jnp.float32)    # [hf | hb]
    ccat = jnp.zeros((BP, 2 * H), jnp.float32)
    for s in range(T):
        tf = s
        tb = T - 1 - s
        z = xproj[s * BP:(s + 1) * BP, :] + jnp.dot(
            hcat, whh, preferred_element_type=jnp.float32)          # (8, 8H)
        i = _sigmoid(z[:, 0:2 * H])
        f = _sigmoid(z[:, 2 * H:4 * H])
        g = jnp.tanh(z[:, 4 * H:6 * H])
        o = _sigmoid(z[:, 6 * H:8 * H])
        c_new = f * ccat + i * g
        h_new = o * jnp.tanh(c_new)
        m = d_ref[TB + s * BP:TB + (s + 1) * BP, :]                 # (8, 2H) lane-dense
        hout = m * h_new
        hcat = hout + (1.0 - m) * hcat
        ccat = m * c_new + (1.0 - m) * ccat
        # fwd half belongs to time tf, bwd half to time tb
        enc_ref[tf * BP:(tf + 1) * BP, 0:H] = hout[:, 0:H]
        enc_ref[tb * BP:(tb + 1) * BP, H:2 * H] = hout[:, H:2 * H]

    # ---- attention (mixes over the batch axis per time step), flattened ------
    enc = enc_ref[...]                                              # (64, E)
    qkv = jnp.dot(enc, wqkv, preferred_element_type=jnp.float32) + bqkv   # (64, 256)
    q = qkv[:, 0:E]                      # 1/sqrt(DH) pre-folded into Wq / bq
    k = qkv[:, E:2 * E]
    v = qkv[:, 2 * E:3 * E]

    logits = jnp.zeros((TB, NTAGS), jnp.float32) + b2
    for h_ in range(NH):                                            # NH=2, unrolled
        qh = q[:, h_ * DH:(h_ + 1) * DH]
        kh = k[:, h_ * DH:(h_ + 1) * DH]
        vh = v[:, h_ * DH:(h_ + 1) * DH]
        s = jax.lax.dot_general(qh, kh, (((1,), (1,)), ((), ())),
                                preferred_element_type=jnp.float32) + attn_mask
        mx = jnp.max(s, axis=-1, keepdims=True)
        e = jnp.exp(s - mx)
        p = e * pl.reciprocal(jnp.sum(e, axis=-1, keepdims=True), approx=True)
        ctx = jnp.dot(p, vh, preferred_element_type=jnp.float32)    # (64, DH)
        w2h = w_ref[W_W2 + h_ * DH:W_W2 + (h_ + 1) * DH, 0:NTAGS]   # (DH, NTAGS)
        logits = logits + jnp.dot(ctx, w2h, preferred_element_type=jnp.float32)

    out_ref[...] = _sigmoid(logits)                                 # (64, NTAGS)


def init_params(key):
    # module.init_weights(): every parameter ~ N(0, 0.1)
    ks = jax.random.split(key, 16)
    std = 0.1

    def nrm(k, shape):
        return std * jax.random.normal(k, shape, dtype=jnp.float32)

    p = {}
    p['embed_table'] = jax.random.normal(ks[0], (VOCAB, DEMB), dtype=jnp.float32)
    p['embed_table'] = p['embed_table'].at[0].set(0.0)   # pad/OOV -> zero embedding
    # nn.LSTM(DEMB, H, bidirectional=True, num_layers=1), PyTorch param shapes
    p['w_ih_f'] = nrm(ks[1], (4 * H, DEMB)); p['w_hh_f'] = nrm(ks[2], (4 * H, H))
    p['b_ih_f'] = nrm(ks[3], (4 * H,));      p['b_hh_f'] = nrm(ks[4], (4 * H,))
    p['w_ih_b'] = nrm(ks[5], (4 * H, DEMB)); p['w_hh_b'] = nrm(ks[6], (4 * H, H))
    p['b_ih_b'] = nrm(ks[7], (4 * H,));      p['b_hh_b'] = nrm(ks[8], (4 * H,))
    # nn.MultiheadAttention(E, NH)
    p['in_proj_w'] = nrm(ks[9], (3 * E, E)); p['in_proj_b'] = nrm(ks[10], (3 * E,))
    p['out_proj_w'] = nrm(ks[11], (E, E));   p['out_proj_b'] = nrm(ks[12], (E,))
    # nn.Linear(E, NTAGS)
    p['out_w'] = nrm(ks[13], (NTAGS, E));    p['out_b'] = nrm(ks[14], (NTAGS,))
    return p


def prepare_params(params):
    """One-time parameter packing (hoisted out of the per-call path)."""
    # fused input / hidden weights with gate-interleaved columns
    # [i_f i_b | f_f f_b | g_f g_b | o_f o_b], each block H wide.
    wih_big = jnp.zeros((2 * DEMB, 8 * H), jnp.float32)
    whh_big = jnp.zeros((2 * H, 8 * H), jnp.float32)
    bih = jnp.zeros((8 * H,), jnp.float32)
    for g_ in range(4):
        src = slice(g_ * H, (g_ + 1) * H)
        fdst = slice(g_ * 2 * H, g_ * 2 * H + H)
        bdst = slice(g_ * 2 * H + H, (g_ + 1) * 2 * H)
        wih_big = wih_big.at[0:DEMB, fdst].set(params['w_ih_f'][src, :].T)
        wih_big = wih_big.at[DEMB:2 * DEMB, bdst].set(params['w_ih_b'][src, :].T)
        whh_big = whh_big.at[0:H, fdst].set(params['w_hh_f'][src, :].T)
        whh_big = whh_big.at[H:2 * H, bdst].set(params['w_hh_b'][src, :].T)
        bih = bih.at[fdst].set(params['b_ih_f'][src] + params['b_hh_f'][src])
        bih = bih.at[bdst].set(params['b_ih_b'][src] + params['b_hh_b'][src])

    # attention QKV weight/bias with 1/sqrt(DH) folded into the Q columns
    scale = 1.0 / float(np.sqrt(DH))
    wqkv = params['in_proj_w'].T                     # (E, 3E)
    wqkv = wqkv.at[:, 0:E].multiply(scale)
    bqkv = params['in_proj_b'].at[0:E].multiply(scale)

    # algebraic fusion of attn.out_proj and output_layer:
    #   logits = sum_h ctx_h @ (Wo.T @ Wout.T)[hDH:(h+1)DH] + (bo @ Wout.T + bout)
    w2 = params['out_proj_w'].T @ params['out_w'].T  # (E, NTAGS)
    b2 = params['out_proj_b'] @ params['out_w'].T + params['out_b']

    W = jnp.zeros((W_ROWS, 8 * H), jnp.float32)
    W = W.at[W_WIH:W_WIH + 2 * DEMB, :].set(wih_big)
    W = W.at[W_WHH:W_WHH + 2 * H, :].set(whh_big)
    W = W.at[W_QKV:W_QKV + E, 0:3 * E].set(wqkv)
    W = W.at[W_W2:W_W2 + E, 0:NTAGS].set(w2)
    W = W.at[W_BIH, :].set(bih)
    W = W.at[W_BQKV, 0:3 * E].set(bqkv)
    W = W.at[W_B2, 0:NTAGS].set(b2)
    return {'W': W, 'embed_table': params['embed_table']}


def tagger_forward(words, lens, prep):
    B_, T_ = words.shape
    assert T_ == T and B_ <= BP

    # embedding lookup (glue); embedding_dropout is identity at inference
    emb = prep['embed_table'][words]                       # (B, T, DEMB)
    emb_tb = jnp.transpose(emb, (1, 0, 2))                 # (T, B, DEMB)
    emb_p = jnp.zeros((T_, BP, DEMB), jnp.float32).at[:, :B_, :].set(emb_tb)
    # row t = [emb(t) | emb(T-1-t)] so one matmul feeds both recurrence directions
    embcat = jnp.concatenate([emb_p, emb_p[::-1]], axis=-1).reshape(TB, 2 * DEMB)

    # lane-dense validity mask, already paired for the fused loop schedule
    valid = (jnp.arange(T_)[None, :] < lens[:, None]).astype(jnp.float32)   # (B, T)
    valid_p = jnp.zeros((T_, BP), jnp.float32).at[:, :B_].set(valid.T)      # (T, BP)
    maskcat = jnp.concatenate(
        [jnp.broadcast_to(valid_p[:, :, None], (T_, BP, H)),
         jnp.broadcast_to(valid_p[::-1][:, :, None], (T_, BP, H))],
        axis=-1).reshape(TB, 2 * H)

    # additive attention mask: block-diagonal over time + key padding + batch pad
    key_ok = jnp.zeros((T_, BP), dtype=bool).at[:, :B_].set((words != 0).T)
    keymask = jnp.where(key_ok, 0.0, NEG).astype(jnp.float32)               # (T, BP)
    attn4 = jnp.where(jnp.eye(T_, dtype=bool)[:, None, :, None],
                      keymask[None, None, :, :], NEG)                       # (T,1,T,BP)
    attn_mask = jnp.broadcast_to(attn4, (T_, BP, T_, BP)).reshape(TB, TB)

    # single data slab (3*TB, 64): [embcat ; maskcat ; attn_mask]
    data = jnp.concatenate([embcat, maskcat, attn_mask], axis=0)

    vmem = pl.BlockSpec(memory_space=pltpu.MemorySpace.VMEM)
    out_p = pl.pallas_call(
        _kernel,
        out_shape=jax.ShapeDtypeStruct((TB, NTAGS), jnp.float32),
        in_specs=[vmem, vmem],
        out_specs=vmem,
        scratch_shapes=[pltpu.VMEM((TB, 2 * H), jnp.float32)],
    )(data, prep['W'])

    out = out_p.reshape(T_, BP, NTAGS)[:, :B_, :]
    return jnp.transpose(out, (1, 0, 2))                   # (B, T, NTAGS)


def reference_forward(words, lens, params):
    """Pure-JAX reference with the exact PyTorch math (for validation)."""
    B_, T_ = words.shape
    emb = params['embed_table'][words]
    valid = (jnp.arange(T_)[None, :] < lens[:, None]).astype(jnp.float32)

    def sig(x):
        return 1.0 / (1.0 + jnp.exp(-x))

    def run_dir(wih, whh, b, reverse):
        h = jnp.zeros((B_, H), jnp.float32)
        c = jnp.zeros((B_, H), jnp.float32)
        outs = [None] * T_
        order = range(T_ - 1, -1, -1) if reverse else range(T_)
        for t in order:
            x = emb[:, t, :]
            z = x @ wih.T + h @ whh.T + b
            i = sig(z[:, 0 * H:1 * H]); f = sig(z[:, 1 * H:2 * H])
            g = jnp.tanh(z[:, 2 * H:3 * H]); o = sig(z[:, 3 * H:4 * H])
            cc = f * c + i * g
            hc = o * jnp.tanh(cc)
            m = valid[:, t:t + 1]
            h = m * hc + (1 - m) * h
            c = m * cc + (1 - m) * c
            outs[t] = m * hc
        return jnp.stack(outs, axis=1)

    hf = run_dir(params['w_ih_f'], params['w_hh_f'],
                 params['b_ih_f'] + params['b_hh_f'], False)
    hb = run_dir(params['w_ih_b'], params['w_hh_b'],
                 params['b_ih_b'] + params['b_hh_b'], True)
    enc = jnp.concatenate([hf, hb], axis=-1)                # (B, T, E)

    wq = params['in_proj_w'][0:E, :]; bq = params['in_proj_b'][0:E]
    wk = params['in_proj_w'][E:2 * E, :]; bk = params['in_proj_b'][E:2 * E]
    wv = params['in_proj_w'][2 * E:3 * E, :]; bv = params['in_proj_b'][2 * E:3 * E]
    q = enc @ wq.T + bq
    k = enc @ wk.T + bk
    v = enc @ wv.T + bv
    neg = jnp.where(words == 0, NEG, 0.0)                   # (B, T)
    woT = params['out_proj_w'].T
    acc = 0.0
    for h_ in range(NH):
        qh = q[..., h_ * DH:(h_ + 1) * DH] / np.sqrt(DH)
        kh = k[..., h_ * DH:(h_ + 1) * DH]
        vh = v[..., h_ * DH:(h_ + 1) * DH]
        scores = jnp.einsum('btd,ctd->tbc', qh, kh) + neg.T[:, None, :]
        p = jax.nn.softmax(scores, axis=-1)
        ctx = jnp.einsum('tbc,ctd->btd', p, vh)
        acc = acc + ctx @ woT[h_ * DH:(h_ + 1) * DH, :]
    attn = acc + params['out_proj_b']
    logits = attn @ params['out_w'].T + params['out_b']
    return sig(logits)


if __name__ == "__main__":
    key = jax.random.PRNGKey(0)
    pkey, wkey = jax.random.split(key)
    params = init_params(pkey)
    prep = prepare_params(params)   # one-time weight packing

    lens = jnp.array([T, 5], dtype=jnp.int32)       # max(lens) == T
    word_ids = jax.random.randint(wkey, (B, T), 1, VOCAB, dtype=jnp.int32)
    keep = (jnp.arange(T)[None, :] < lens[:, None])
    words = jnp.where(keep, word_ids, 0)            # pad id == 0 (key_padding_mask)

    fwd = jax.jit(tagger_forward)
    out = jax.block_until_ready(fwd(words, lens, prep))

    ref = reference_forward(words, lens, params)
    np.testing.assert_allclose(np.asarray(out), np.asarray(ref),
                               atol=5e-3, rtol=5e-3)
    assert out.shape == (B, T, NTAGS)
    print("KERNEL_OK")
</pallas_src>

<mosaic_0001>
module attributes {stable_mosaic.version = 11 : i64} {
  func.func @_kernel(%arg0: memref<192x64xf32, #tpu.memory_space<vmem>>, %arg1: memref<264x256xf32, #tpu.memory_space<vmem>>, %arg2: memref<64x8xf32, #tpu.memory_space<vmem>>, %arg3: memref<64x64xf32, #tpu.memory_space<vmem>>) attributes {dimension_semantics = [], scalar_prefetch = 0 : i64, scratch_operands = 1 : i64, tpu.core_type = #tpu.core_type<tc>} {
    %c0 = arith.constant 0 : index
    %c0_0 = arith.constant 0 : index
    %0 = vector.load %arg0[%c0, %c0_0] : memref<192x64xf32, #tpu.memory_space<vmem>>, vector<64x64xf32>
    %c128 = arith.constant 128 : index
    %c0_1 = arith.constant 0 : index
    %1 = vector.load %arg0[%c128, %c0_1] : memref<192x64xf32, #tpu.memory_space<vmem>>, vector<64x64xf32>
    %c0_2 = arith.constant 0 : index
    %c0_3 = arith.constant 0 : index
    %2 = vector.load %arg1[%c0_2, %c0_3] : memref<264x256xf32, #tpu.memory_space<vmem>>, vector<64x256xf32>
    %c64 = arith.constant 64 : index
    %c0_4 = arith.constant 0 : index
    %3 = vector.load %arg1[%c64, %c0_4] : memref<264x256xf32, #tpu.memory_space<vmem>>, vector<64x256xf32>
    %c128_5 = arith.constant 128 : index
    %c0_6 = arith.constant 0 : index
    %4 = vector.load %arg1[%c128_5, %c0_6] : memref<264x256xf32, #tpu.memory_space<vmem>>, vector<64x256xf32>
    %c256 = arith.constant 256 : index
    %c0_7 = arith.constant 0 : index
    %5 = vector.load %arg1[%c256, %c0_7] : memref<264x256xf32, #tpu.memory_space<vmem>>, vector<1x256xf32>
    %c257 = arith.constant 257 : index
    %c0_8 = arith.constant 0 : index
    %6 = vector.load %arg1[%c257, %c0_8] : memref<264x256xf32, #tpu.memory_space<vmem>>, vector<1x256xf32>
    %c258 = arith.constant 258 : index
    %c0_9 = arith.constant 0 : index
    %7 = vector.load %arg1[%c258, %c0_9] : memref<264x256xf32, #tpu.memory_space<vmem>>, vector<1x8xf32>
    %cst = arith.constant dense<0.000000e+00> : vector<64x256xf32>
    %8 = tpu.matmul %0, %2, %cst {dimension_numbers = #tpu.dot_dimension_numbers<[1], [0], [0], [1], [0, 0, 1, 1], [], []>} : vector<64x64xf32>, vector<64x256xf32>, vector<64x256xf32> -> vector<64x256xf32>
    %9 = vector.broadcast %5 : vector<1x256xf32> to vector<64x256xf32>
    %10 = arith.addf %8, %9 : vector<64x256xf32>
    %cst_10 = arith.constant 0.000000e+00 : f32
    %11 = vector.broadcast %cst_10 : f32 to vector<8x64xf32>
    %cst_11 = arith.constant 0.000000e+00 : f32
    %12 = vector.broadcast %cst_11 : f32 to vector<8x64xf32>
    %13 = vector.extract_strided_slice %10 {offsets = [0, 0], sizes = [8, 256], strides = [1, 1]} : vector<64x256xf32> to vector<8x256xf32>
    %cst_12 = arith.constant dense<0.000000e+00> : vector<8x256xf32>
    %14 = tpu.matmul %11, %3, %cst_12 {dimension_numbers = #tpu.dot_dimension_numbers<[1], [0], [0], [1], [0, 0, 1, 1], [], []>} : vector<8x64xf32>, vector<64x256xf32>, vector<8x256xf32> -> vector<8x256xf32>
    %15 = arith.addf %13, %14 : vector<8x256xf32>
    %16 = vector.extract_strided_slice %15 {offsets = [0, 0], sizes = [8, 64], strides = [1, 1]} : vector<8x256xf32> to vector<8x64xf32>
    %cst_13 = arith.constant 5.000000e-01 : f32
    %17 = vector.broadcast %cst_13 : f32 to vector<8x64xf32>
    %18 = arith.mulf %17, %16 : vector<8x64xf32>
    %19 = math.tanh %18 : vector<8x64xf32>
    %cst_14 = arith.constant 1.000000e+00 : f32
    %20 = vector.broadcast %cst_14 : f32 to vector<8x64xf32>
    %21 = arith.addf %19, %20 : vector<8x64xf32>
    %cst_15 = arith.constant 5.000000e-01 : f32
    %22 = vector.broadcast %cst_15 : f32 to vector<8x64xf32>
    %23 = arith.mulf %22, %21 : vector<8x64xf32>
    %24 = vector.extract_strided_slice %15 {offsets = [0, 64], sizes = [8, 64], strides = [1, 1]} : vector<8x256xf32> to vector<8x64xf32>
    %cst_16 = arith.constant 5.000000e-01 : f32
    %25 = vector.broadcast %cst_16 : f32 to vector<8x64xf32>
    %26 = arith.mulf %25, %24 : vector<8x64xf32>
    %27 = math.tanh %26 : vector<8x64xf32>
    %cst_17 = arith.constant 1.000000e+00 : f32
    %28 = vector.broadcast %cst_17 : f32 to vector<8x64xf32>
    %29 = arith.addf %27, %28 : vector<8x64xf32>
    %cst_18 = arith.constant 5.000000e-01 : f32
    %30 = vector.broadcast %cst_18 : f32 to vector<8x64xf32>
    %31 = arith.mulf %30, %29 : vector<8x64xf32>
    %32 = vector.extract_strided_slice %15 {offsets = [0, 128], sizes = [8, 64], strides = [1, 1]} : vector<8x256xf32> to vector<8x64xf32>
    %33 = math.tanh %32 : vector<8x64xf32>
    %34 = vector.extract_strided_slice %15 {offsets = [0, 192], sizes = [8, 64], strides = [1, 1]} : vector<8x256xf32> to vector<8x64xf32>
    %cst_19 = arith.constant 5.000000e-01 : f32
    %35 = vector.broadcast %cst_19 : f32 to vector<8x64xf32>
    %36 = arith.mulf %35, %34 : vector<8x64xf32>
    %37 = math.tanh %36 : vector<8x64xf32>
    %cst_20 = arith.constant 1.000000e+00 : f32
    %38 = vector.broadcast %cst_20 : f32 to vector<8x64xf32>
    %39 = arith.addf %37, %38 : vector<8x64xf32>
    %cst_21 = arith.constant 5.000000e-01 : f32
    %40 = vector.broadcast %cst_21 : f32 to vector<8x64xf32>
    %41 = arith.mulf %40, %39 : vector<8x64xf32>
    %42 = arith.mulf %31, %12 : vector<8x64xf32>
    %43 = arith.mulf %23, %33 : vector<8x64xf32>
    %44 = arith.addf %42, %43 : vector<8x64xf32>
    %45 = math.tanh %44 : vector<8x64xf32>
    %46 = arith.mulf %41, %45 : vector<8x64xf32>
    %c64_22 = arith.constant 64 : index
    %c0_23 = arith.constant 0 : index
    %47 = vector.load %arg0[%c64_22, %c0_23] : memref<192x64xf32, #tpu.memory_space<vmem>>, vector<8x64xf32>
    %48 = arith.mulf %47, %46 : vector<8x64xf32>
    %cst_24 = arith.constant 1.000000e+00 : f32
    %49 = vector.broadcast %cst_24 : f32 to vector<8x64xf32>
    %50 = arith.subf %49, %47 : vector<8x64xf32>
    %51 = arith.mulf %50, %11 : vector<8x64xf32>
    %52 = arith.addf %48, %51 : vector<8x64xf32>
    %53 = arith.mulf %47, %44 : vector<8x64xf32>
    %cst_25 = arith.constant 1.000000e+00 : f32
    %54 = vector.broadcast %cst_25 : f32 to vector<8x64xf32>
    %55 = arith.subf %54, %47 : vector<8x64xf32>
    %56 = arith.mulf %55, %12 : vector<8x64xf32>
    %57 = arith.addf %53, %56 : vector<8x64xf32>
    %58 = vector.extract_strided_slice %48 {offsets = [0, 0], sizes = [8, 32], strides = [1, 1]} : vector<8x64xf32> to vector<8x32xf32>
    %c0_26 = arith.constant 0 : index
    %c0_27 = arith.constant 0 : index
    %59 = vector.load %arg3[%c0_26, %c0_27] : memref<64x64xf32, #tpu.memory_space<vmem>>, vector<8x32xf32>
    tpu.vector_store %arg3[%c0_26, %c0_27], %58 {strides = array<i32>} : memref<64x64xf32, #tpu.memory_space<vmem>>, vector<8x32xf32>,
    %60 = vector.extract_strided_slice %48 {offsets = [0, 32], sizes = [8, 32], strides = [1, 1]} : vector<8x64xf32> to vector<8x32xf32>
    %c56 = arith.constant 56 : index
    %c32 = arith.constant 32 : index
    %61 = vector.load %arg3[%c56, %c32] : memref<64x64xf32, #tpu.memory_space<vmem>>, vector<8x32xf32>
    tpu.vector_store %arg3[%c56, %c32], %60 {strides = array<i32>} : memref<64x64xf32, #tpu.memory_space<vmem>>, vector<8x32xf32>,
    %62 = vector.extract_strided_slice %10 {offsets = [8, 0], sizes = [8, 256], strides = [1, 1]} : vector<64x256xf32> to vector<8x256xf32>
    %cst_28 = arith.constant dense<0.000000e+00> : vector<8x256xf32>
    %63 = tpu.matmul %52, %3, %cst_28 {dimension_numbers = #tpu.dot_dimension_numbers<[1], [0], [0], [1], [0, 0, 1, 1], [], []>} : vector<8x64xf32>, vector<64x256xf32>, vector<8x256xf32> -> vector<8x256xf32>
    %64 = arith.addf %62, %63 : vector<8x256xf32>
    %65 = vector.extract_strided_slice %64 {offsets = [0, 0], sizes = [8, 64], strides = [1, 1]} : vector<8x256xf32> to vector<8x64xf32>
    %cst_29 = arith.constant 5.000000e-01 : f32
    %66 = vector.broadcast %cst_29 : f32 to vector<8x64xf32>
    %67 = arith.mulf %66, %65 : vector<8x64xf32>
    %68 = math.tanh %67 : vector<8x64xf32>
    %cst_30 = arith.constant 1.000000e+00 : f32
    %69 = vector.broadcast %cst_30 : f32 to vector<8x64xf32>
    %70 = arith.addf %68, %69 : vector<8x64xf32>
    %cst_31 = arith.constant 5.000000e-01 : f32
    %71 = vector.broadcast %cst_31 : f32 to vector<8x64xf32>
    %72 = arith.mulf %71, %70 : vector<8x64xf32>
    %73 = vector.extract_strided_slice %64 {offsets = [0, 64], sizes = [8, 64], strides = [1, 1]} : vector<8x256xf32> to vector<8x64xf32>
    %cst_32 = arith.constant 5.000000e-01 : f32
    %74 = vector.broadcast %cst_32 : f32 to vector<8x64xf32>
    %75 = arith.mulf %74, %73 : vector<8x64xf32>
    %76 = math.tanh %75 : vector<8x64xf32>
    %cst_33 = arith.constant 1.000000e+00 : f32
    %77 = vector.broadcast %cst_33 : f32 to vector<8x64xf32>
    %78 = arith.addf %76, %77 : vector<8x64xf32>
    %cst_34 = arith.constant 5.000000e-01 : f32
    %79 = vector.broadcast %cst_34 : f32 to vector<8x64xf32>
    %80 = arith.mulf %79, %78 : vector<8x64xf32>
    %81 = vector.extract_strided_slice %64 {offsets = [0, 128], sizes = [8, 64], strides = [1, 1]} : vector<8x256xf32> to vector<8x64xf32>
    %82 = math.tanh %81 : vector<8x64xf32>
    %83 = vector.extract_strided_slice %64 {offsets = [0, 192], sizes = [8, 64], strides = [1, 1]} : vector<8x256xf32> to vector<8x64xf32>
    %cst_35 = arith.constant 5.000000e-01 : f32
    %84 = vector.broadcast %cst_35 : f32 to vector<8x64xf32>
    %85 = arith.mulf %84, %83 : vector<8x64xf32>
    %86 = math.tanh %85 : vector<8x64xf32>
    %cst_36 = arith.constant 1.000000e+00 : f32
    %87 = vector.broadcast %cst_36 : f32 to vector<8x64xf32>
    %88 = arith.addf %86, %87 : vector<8x64xf32>
    %cst_37 = arith.constant 5.000000e-01 : f32
    %89 = vector.broadcast %cst_37 : f32 to vector<8x64xf32>
    %90 = arith.mulf %89, %88 : vector<8x64xf32>
    %91 = arith.mulf %80, %57 : vector<8x64xf32>
    %92 = arith.mulf %72, %82 : vector<8x64xf32>
    %93 = arith.addf %91, %92 : vector<8x64xf32>
    %94 = math.tanh %93 : vector<8x64xf32>
    %95 = arith.mulf %90, %94 : vector<8x64xf32>
    %c72 = arith.constant 72 : index
    %c0_38 = arith.constant 0 : index
    %96 = vector.load %arg0[%c72, %c0_38] : memref<192x64xf32, #tpu.memory_space<vmem>>, vector<8x64xf32>
    %97 = arith.mulf %96, %95 : vector<8x64xf32>
    %cst_39 = arith.constant 1.000000e+00 : f32
    %98 = vector.broadcast %cst_39 : f32 to vector<8x64xf32>
    %99 = arith.subf %98, %96 : vector<8x64xf32>
    %100 = arith.mulf %99, %52 : vector<8x64xf32>
    %101 = arith.addf %97, %100 : vector<8x64xf32>
    %102 = arith.mulf %96, %93 : vector<8x64xf32>
    %cst_40 = arith.constant 1.000000e+00 : f32
    %103 = vector.broadcast %cst_40 : f32 to vector<8x64xf32>
    %104 = arith.subf %103, %96 : vector<8x64xf32>
    %105 = arith.mulf %104, %57 : vector<8x64xf32>
    %106 = arith.addf %102, %105 : vector<8x64xf32>
    %107 = vector.extract_strided_slice %97 {offsets = [0, 0], sizes = [8, 32], strides = [1, 1]} : vector<8x64xf32> to vector<8x32xf32>
    %c8 = arith.constant 8 : index
    %c0_41 = arith.constant 0 : index
    %108 = vector.load %arg3[%c8, %c0_41] : memref<64x64xf32, #tpu.memory_space<vmem>>, vector<8x32xf32>
    tpu.vector_store %arg3[%c8, %c0_41], %107 {strides = array<i32>} : memref<64x64xf32, #tpu.memory_space<vmem>>, vector<8x32xf32>,
    %109 = vector.extract_strided_slice %97 {offsets = [0, 32], sizes = [8, 32], strides = [1, 1]} : vector<8x64xf32> to vector<8x32xf32>
    %c48 = arith.constant 48 : index
    %c32_42 = arith.constant 32 : index
    %110 = vector.load %arg3[%c48, %c32_42] : memref<64x64xf32, #tpu.memory_space<vmem>>, vector<8x32xf32>
    tpu.vector_store %arg3[%c48, %c32_42], %109 {strides = array<i32>} : memref<64x64xf32, #tpu.memory_space<vmem>>, vector<8x32xf32>,
    %111 = vector.extract_strided_slice %10 {offsets = [16, 0], sizes = [8, 256], strides = [1, 1]} : vector<64x256xf32> to vector<8x256xf32>
    %cst_43 = arith.constant dense<0.000000e+00> : vector<8x256xf32>
    %112 = tpu.matmul %101, %3, %cst_43 {dimension_numbers = #tpu.dot_dimension_numbers<[1], [0], [0], [1], [0, 0, 1, 1], [], []>} : vector<8x64xf32>, vector<64x256xf32>, vector<8x256xf32> -> vector<8x256xf32>
    %113 = arith.addf %111, %112 : vector<8x256xf32>
    %114 = vector.extract_strided_slice %113 {offsets = [0, 0], sizes = [8, 64], strides = [1, 1]} : vector<8x256xf32> to vector<8x64xf32>
    %cst_44 = arith.constant 5.000000e-01 : f32
    %115 = vector.broadcast %cst_44 : f32 to vector<8x64xf32>
    %116 = arith.mulf %115, %114 : vector<8x64xf32>
    %117 = math.tanh %116 : vector<8x64xf32>
    %cst_45 = arith.constant 1.000000e+00 : f32
    %118 = vector.broadcast %cst_45 : f32 to vector<8x64xf32>
    %119 = arith.addf %117, %118 : vector<8x64xf32>
    %cst_46 = arith.constant 5.000000e-01 : f32
    %120 = vector.broadcast %cst_46 : f32 to vector<8x64xf32>
    %121 = arith.mulf %120, %119 : vector<8x64xf32>
    %122 = vector.extract_strided_slice %113 {offsets = [0, 64], sizes = [8, 64], strides = [1, 1]} : vector<8x256xf32> to vector<8x64xf32>
    %cst_47 = arith.constant 5.000000e-01 : f32
    %123 = vector.broadcast %cst_47 : f32 to vector<8x64xf32>
    %124 = arith.mulf %123, %122 : vector<8x64xf32>
    %125 = math.tanh %124 : vector<8x64xf32>
    %cst_48 = arith.constant 1.000000e+00 : f32
    %126 = vector.broadcast %cst_48 : f32 to vector<8x64xf32>
    %127 = arith.addf %125, %126 : vector<8x64xf32>
    %cst_49 = arith.constant 5.000000e-01 : f32
    %128 = vector.broadcast %cst_49 : f32 to vector<8x64xf32>
    %129 = arith.mulf %128, %127 : vector<8x64xf32>
    %130 = vector.extract_strided_slice %113 {offsets = [0, 128], sizes = [8, 64], strides = [1, 1]} : vector<8x256xf32> to vector<8x64xf32>
    %131 = math.tanh %130 : vector<8x64xf32>
    %132 = vector.extract_strided_slice %113 {offsets = [0, 192], sizes = [8, 64], strides = [1, 1]} : vector<8x256xf32> to vector<8x64xf32>
    %cst_50 = arith.constant 5.000000e-01 : f32
    %133 = vector.broadcast %cst_50 : f32 to vector<8x64xf32>
    %134 = arith.mulf %133, %132 : vector<8x64xf32>
    %135 = math.tanh %134 : vector<8x64xf32>
    %cst_51 = arith.constant 1.000000e+00 : f32
    %136 = vector.broadcast %cst_51 : f32 to vector<8x64xf32>
    %137 = arith.addf %135, %136 : vector<8x64xf32>
    %cst_52 = arith.constant 5.000000e-01 : f32
    %138 = vector.broadcast %cst_52 : f32 to vector<8x64xf32>
    %139 = arith.mulf %138, %137 : vector<8x64xf32>
    %140 = arith.mulf %129, %106 : vector<8x64xf32>
    %141 = arith.mulf %121, %131 : vector<8x64xf32>
    %142 = arith.addf %140, %141 : vector<8x64xf32>
    %143 = math.tanh %142 : vector<8x64xf32>
    %144 = arith.mulf %139, %143 : vector<8x64xf32>
    %c80 = arith.constant 80 : index
    %c0_53 = arith.constant 0 : index
    %145 = vector.load %arg0[%c80, %c0_53] : memref<192x64xf32, #tpu.memory_space<vmem>>, vector<8x64xf32>
    %146 = arith.mulf %145, %144 : vector<8x64xf32>
    %cst_54 = arith.constant 1.000000e+00 : f32
    %147 = vector.broadcast %cst_54 : f32 to vector<8x64xf32>
    %148 = arith.subf %147, %145 : vector<8x64xf32>
    %149 = arith.mulf %148, %101 : vector<8x64xf32>
    %150 = arith.addf %146, %149 : vector<8x64xf32>
    %151 = arith.mulf %145, %142 : vector<8x64xf32>
    %cst_55 = arith.constant 1.000000e+00 : f32
    %152 = vector.broadcast %cst_55 : f32 to vector<8x64xf32>
    %153 = arith.subf %152, %145 : vector<8x64xf32>
    %154 = arith.mulf %153, %106 : vector<8x64xf32>
    %155 = arith.addf %151, %154 : vector<8x64xf32>
    %156 = vector.extract_strided_slice %146 {offsets = [0, 0], sizes = [8, 32], strides = [1, 1]} : vector<8x64xf32> to vector<8x32xf32>
    %c16 = arith.constant 16 : index
    %c0_56 = arith.constant 0 : index
    %157 = vector.load %arg3[%c16, %c0_56] : memref<64x64xf32, #tpu.memory_space<vmem>>, vector<8x32xf32>
    tpu.vector_store %arg3[%c16, %c0_56], %156 {strides = array<i32>} : memref<64x64xf32, #tpu.memory_space<vmem>>, vector<8x32xf32>,
    %158 = vector.extract_strided_slice %146 {offsets = [0, 32], sizes = [8, 32], strides = [1, 1]} : vector<8x64xf32> to vector<8x32xf32>
    %c40 = arith.constant 40 : index
    %c32_57 = arith.constant 32 : index
    %159 = vector.load %arg3[%c40, %c32_57] : memref<64x64xf32, #tpu.memory_space<vmem>>, vector<8x32xf32>
    tpu.vector_store %arg3[%c40, %c32_57], %158 {strides = array<i32>} : memref<64x64xf32, #tpu.memory_space<vmem>>, vector<8x32xf32>,
    %160 = vector.extract_strided_slice %10 {offsets = [24, 0], sizes = [8, 256], strides = [1, 1]} : vector<64x256xf32> to vector<8x256xf32>
    %cst_58 = arith.constant dense<0.000000e+00> : vector<8x256xf32>
    %161 = tpu.matmul %150, %3, %cst_58 {dimension_numbers = #tpu.dot_dimension_numbers<[1], [0], [0], [1], [0, 0, 1, 1], [], []>} : vector<8x64xf32>, vector<64x256xf32>, vector<8x256xf32> -> vector<8x256xf32>
    %162 = arith.addf %160, %161 : vector<8x256xf32>
    %163 = vector.extract_strided_slice %162 {offsets = [0, 0], sizes = [8, 64], strides = [1, 1]} : vector<8x256xf32> to vector<8x64xf32>
    %cst_59 = arith.constant 5.000000e-01 : f32
    %164 = vector.broadcast %cst_59 : f32 to vector<8x64xf32>
    %165 = arith.mulf %164, %163 : vector<8x64xf32>
    %166 = math.tanh %165 : vector<8x64xf32>
    %cst_60 = arith.constant 1.000000e+00 : f32
    %167 = vector.broadcast %cst_60 : f32 to vector<8x64xf32>
    %168 = arith.addf %166, %167 : vector<8x64xf32>
    %cst_61 = arith.constant 5.000000e-01 : f32
    %169 = vector.broadcast %cst_61 : f32 to vector<8x64xf32>
    %170 = arith.mulf %169, %168 : vector<8x64xf32>
    %171 = vector.extract_strided_slice %162 {offsets = [0, 64], sizes = [8, 64], strides = [1, 1]} : vector<8x256xf32> to vector<8x64xf32>
    %cst_62 = arith.constant 5.000000e-01 : f32
    %172 = vector.broadcast %cst_62 : f32 to vector<8x64xf32>
    %173 = arith.mulf %172, %171 : vector<8x64xf32>
    %174 = math.tanh %173 : vector<8x64xf32>
    %cst_63 = arith.constant 1.000000e+00 : f32
    %175 = vector.broadcast %cst_63 : f32 to vector<8x64xf32>
    %176 = arith.addf %174, %175 : vector<8x64xf32>
    %cst_64 = arith.constant 5.000000e-01 : f32
    %177 = vector.broadcast %cst_64 : f32 to vector<8x64xf32>
    %178 = arith.mulf %177, %176 : vector<8x64xf32>
    %179 = vector.extract_strided_slice %162 {offsets = [0, 128], sizes = [8, 64], strides = [1, 1]} : vector<8x256xf32> to vector<8x64xf32>
    %180 = math.tanh %179 : vector<8x64xf32>
    %181 = vector.extract_strided_slice %162 {offsets = [0, 192], sizes = [8, 64], strides = [1, 1]} : vector<8x256xf32> to vector<8x64xf32>
    %cst_65 = arith.constant 5.000000e-01 : f32
    %182 = vector.broadcast %cst_65 : f32 to vector<8x64xf32>
    %183 = arith.mulf %182, %181 : vector<8x64xf32>
    %184 = math.tanh %183 : vector<8x64xf32>
    %cst_66 = arith.constant 1.000000e+00 : f32
    %185 = vector.broadcast %cst_66 : f32 to vector<8x64xf32>
    %186 = arith.addf %184, %185 : vector<8x64xf32>
    %cst_67 = arith.constant 5.000000e-01 : f32
    %187 = vector.broadcast %cst_67 : f32 to vector<8x64xf32>
    %188 = arith.mulf %187, %186 : vector<8x64xf32>
    %189 = arith.mulf %178, %155 : vector<8x64xf32>
    %190 = arith.mulf %170, %180 : vector<8x64xf32>
    %191 = arith.addf %189, %190 : vector<8x64xf32>
    %192 = math.tanh %191 : vector<8x64xf32>
    %193 = arith.mulf %188, %192 : vector<8x64xf32>
    %c88 = arith.constant 88 : index
    %c0_68 = arith.constant 0 : index
    %194 = vector.load %arg0[%c88, %c0_68] : memref<192x64xf32, #tpu.memory_space<vmem>>, vector<8x64xf32>
    %195 = arith.mulf %194, %193 : vector<8x64xf32>
    %cst_69 = arith.constant 1.000000e+00 : f32
    %196 = vector.broadcast %cst_69 : f32 to vector<8x64xf32>
    %197 = arith.subf %196, %194 : vector<8x64xf32>
    %198 = arith.mulf %197, %150 : vector<8x64xf32>
    %199 = arith.addf %195, %198 : vector<8x64xf32>
    %200 = arith.mulf %194, %191 : vector<8x64xf32>
    %cst_70 = arith.constant 1.000000e+00 : f32
    %201 = vector.broadcast %cst_70 : f32 to vector<8x64xf32>
    %202 = arith.subf %201, %194 : vector<8x64xf32>
    %203 = arith.mulf %202, %155 : vector<8x64xf32>
    %204 = arith.addf %200, %203 : vector<8x64xf32>
    %205 = vector.extract_strided_slice %195 {offsets = [0, 0], sizes = [8, 32], strides = [1, 1]} : vector<8x64xf32> to vector<8x32xf32>
    %c24 = arith.constant 24 : index
    %c0_71 = arith.constant 0 : index
    %206 = vector.load %arg3[%c24, %c0_71] : memref<64x64xf32, #tpu.memory_space<vmem>>, vector<8x32xf32>
    tpu.vector_store %arg3[%c24, %c0_71], %205 {strides = array<i32>} : memref<64x64xf32, #tpu.memory_space<vmem>>, vector<8x32xf32>,
    %207 = vector.extract_strided_slice %195 {offsets = [0, 32], sizes = [8, 32], strides = [1, 1]} : vector<8x64xf32> to vector<8x32xf32>
    %c32_72 = arith.constant 32 : index
    %c32_73 = arith.constant 32 : index
    %208 = vector.load %arg3[%c32_72, %c32_73] : memref<64x64xf32, #tpu.memory_space<vmem>>, vector<8x32xf32>
    tpu.vector_store %arg3[%c32_72, %c32_73], %207 {strides = array<i32>} : memref<64x64xf32, #tpu.memory_space<vmem>>, vector<8x32xf32>,
    %209 = vector.extract_strided_slice %10 {offsets = [32, 0], sizes = [8, 256], strides = [1, 1]} : vector<64x256xf32> to vector<8x256xf32>
    %cst_74 = arith.constant dense<0.000000e+00> : vector<8x256xf32>
    %210 = tpu.matmul %199, %3, %cst_74 {dimension_numbers = #tpu.dot_dimension_numbers<[1], [0], [0], [1], [0, 0, 1, 1], [], []>} : vector<8x64xf32>, vector<64x256xf32>, vector<8x256xf32> -> vector<8x256xf32>
    %211 = arith.addf %209, %210 : vector<8x256xf32>
    %212 = vector.extract_strided_slice %211 {offsets = [0, 0], sizes = [8, 64], strides = [1, 1]} : vector<8x256xf32> to vector<8x64xf32>
    %cst_75 = arith.constant 5.000000e-01 : f32
    %213 = vector.broadcast %cst_75 : f32 to vector<8x64xf32>
    %214 = arith.mulf %213, %212 : vector<8x64xf32>
    %215 = math.tanh %214 : vector<8x64xf32>
    %cst_76 = arith.constant 1.000000e+00 : f32
    %216 = vector.broadcast %cst_76 : f32 to vector<8x64xf32>
    %217 = arith.addf %215, %216 : vector<8x64xf32>
    %cst_77 = arith.constant 5.000000e-01 : f32
    %218 = vector.broadcast %cst_77 : f32 to vector<8x64xf32>
    %219 = arith.mulf %218, %217 : vector<8x64xf32>
    %220 = vector.extract_strided_slice %211 {offsets = [0, 64], sizes = [8, 64], strides = [1, 1]} : vector<8x256xf32> to vector<8x64xf32>
    %cst_78 = arith.constant 5.000000e-01 : f32
    %221 = vector.broadcast %cst_78 : f32 to vector<8x64xf32>
    %222 = arith.mulf %221, %220 : vector<8x64xf32>
    %223 = math.tanh %222 : vector<8x64xf32>
    %cst_79 = arith.constant 1.000000e+00 : f32
    %224 = vector.broadcast %cst_79 : f32 to vector<8x64xf32>
    %225 = arith.addf %223, %224 : vector<8x64xf32>
    %cst_80 = arith.constant 5.000000e-01 : f32
    %226 = vector.broadcast %cst_80 : f32 to vector<8x64xf32>
    %227 = arith.mulf %226, %225 : vector<8x64xf32>
    %228 = vector.extract_strided_slice %211 {offsets = [0, 128], sizes = [8, 64], strides = [1, 1]} : vector<8x256xf32> to vector<8x64xf32>
    %229 = math.tanh %228 : vector<8x64xf32>
    %230 = vector.extract_strided_slice %211 {offsets = [0, 192], sizes = [8, 64], strides = [1, 1]} : vector<8x256xf32> to vector<8x64xf32>
    %cst_81 = arith.constant 5.000000e-01 : f32
    %231 = vector.broadcast %cst_81 : f32 to vector<8x64xf32>
    %232 = arith.mulf %231, %230 : vector<8x64xf32>
    %233 = math.tanh %232 : vector<8x64xf32>
    %cst_82 = arith.constant 1.000000e+00 : f32
    %234 = vector.broadcast %cst_82 : f32 to vector<8x64xf32>
    %235 = arith.addf %233, %234 : vector<8x64xf32>
    %cst_83 = arith.constant 5.000000e-01 : f32
    %236 = vector.broadcast %cst_83 : f32 to vector<8x64xf32>
    %237 = arith.mulf %236, %235 : vector<8x64xf32>
    %238 = arith.mulf %227, %204 : vector<8x64xf32>
    %239 = arith.mulf %219, %229 : vector<8x64xf32>
    %240 = arith.addf %238, %239 : vector<8x64xf32>
    %241 = math.tanh %240 : vector<8x64xf32>
    %242 = arith.mulf %237, %241 : vector<8x64xf32>
    %c96 = arith.constant 96 : index
    %c0_84 = arith.constant 0 : index
    %243 = vector.load %arg0[%c96, %c0_84] : memref<192x64xf32, #tpu.memory_space<vmem>>, vector<8x64xf32>
    %244 = arith.mulf %243, %242 : vector<8x64xf32>
    %cst_85 = arith.constant 1.000000e+00 : f32
    %245 = vector.broadcast %cst_85 : f32 to vector<8x64xf32>
    %246 = arith.subf %245, %243 : vector<8x64xf32>
    %247 = arith.mulf %246, %199 : vector<8x64xf32>
    %248 = arith.addf %244, %247 : vector<8x64xf32>
    %249 = arith.mulf %243, %240 : vector<8x64xf32>
    %cst_86 = arith.constant 1.000000e+00 : f32
    %250 = vector.broadcast %cst_86 : f32 to vector<8x64xf32>
    %251 = arith.subf %250, %243 : vector<8x64xf32>
    %252 = arith.mulf %251, %204 : vector<8x64xf32>
    %253 = arith.addf %249, %252 : vector<8x64xf32>
    %254 = vector.extract_strided_slice %244 {offsets = [0, 0], sizes = [8, 32], strides = [1, 1]} : vector<8x64xf32> to vector<8x32xf32>
    %c32_87 = arith.constant 32 : index
    %c0_88 = arith.constant 0 : index
    %255 = vector.load %arg3[%c32_87, %c0_88] : memref<64x64xf32, #tpu.memory_space<vmem>>, vector<8x32xf32>
    tpu.vector_store %arg3[%c32_87, %c0_88], %254 {strides = array<i32>} : memref<64x64xf32, #tpu.memory_space<vmem>>, vector<8x32xf32>,
    %256 = vector.extract_strided_slice %244 {offsets = [0, 32], sizes = [8, 32], strides = [1, 1]} : vector<8x64xf32> to vector<8x32xf32>
    %c24_89 = arith.constant 24 : index
    %c32_90 = arith.constant 32 : index
    %257 = vector.load %arg3[%c24_89, %c32_90] : memref<64x64xf32, #tpu.memory_space<vmem>>, vector<8x32xf32>
    tpu.vector_store %arg3[%c24_89, %c32_90], %256 {strides = array<i32>} : memref<64x64xf32, #tpu.memory_space<vmem>>, vector<8x32xf32>,
    %258 = vector.extract_strided_slice %10 {offsets = [40, 0], sizes = [8, 256], strides = [1, 1]} : vector<64x256xf32> to vector<8x256xf32>
    %cst_91 = arith.constant dense<0.000000e+00> : vector<8x256xf32>
    %259 = tpu.matmul %248, %3, %cst_91 {dimension_numbers = #tpu.dot_dimension_numbers<[1], [0], [0], [1], [0, 0, 1, 1], [], []>} : vector<8x64xf32>, vector<64x256xf32>, vector<8x256xf32> -> vector<8x256xf32>
    %260 = arith.addf %258, %259 : vector<8x256xf32>
    %261 = vector.extract_strided_slice %260 {offsets = [0, 0], sizes = [8, 64], strides = [1, 1]} : vector<8x256xf32> to vector<8x64xf32>
    %cst_92 = arith.constant 5.000000e-01 : f32
    %262 = vector.broadcast %cst_92 : f32 to vector<8x64xf32>
    %263 = arith.mulf %262, %261 : vector<8x64xf32>
    %264 = math.tanh %263 : vector<8x64xf32>
    %cst_93 = arith.constant 1.000000e+00 : f32
    %265 = vector.broadcast %cst_93 : f32 to vector<8x64xf32>
    %266 = arith.addf %264, %265 : vector<8x64xf32>
    %cst_94 = arith.constant 5.000000e-01 : f32
    %267 = vector.broadcast %cst_94 : f32 to vector<8x64xf32>
    %268 = arith.mulf %267, %266 : vector<8x64xf32>
    %269 = vector.extract_strided_slice %260 {offsets = [0, 64], sizes = [8, 64], strides = [1, 1]} : vector<8x256xf32> to vector<8x64xf32>
    %cst_95 = arith.constant 5.000000e-01 : f32
    %270 = vector.broadcast %cst_95 : f32 to vector<8x64xf32>
    %271 = arith.mulf %270, %269 : vector<8x64xf32>
    %272 = math.tanh %271 : vector<8x64xf32>
    %cst_96 = arith.constant 1.000000e+00 : f32
    %273 = vector.broadcast %cst_96 : f32 to vector<8x64xf32>
    %274 = arith.addf %272, %273 : vector<8x64xf32>
    %cst_97 = arith.constant 5.000000e-01 : f32
    %275 = vector.broadcast %cst_97 : f32 to vector<8x64xf32>
    %276 = arith.mulf %275, %274 : vector<8x64xf32>
    %277 = vector.extract_strided_slice %260 {offsets = [0, 128], sizes = [8, 64], strides = [1, 1]} : vector<8x256xf32> to vector<8x64xf32>
    %278 = math.tanh %277 : vector<8x64xf32>
    %279 = vector.extract_strided_slice %260 {offsets = [0, 192], sizes = [8, 64], strides = [1, 1]} : vector<8x256xf32> to vector<8x64xf32>
    %cst_98 = arith.constant 5.000000e-01 : f32
    %280 = vector.broadcast %cst_98 : f32 to vector<8x64xf32>
    %281 = arith.mulf %280, %279 : vector<8x64xf32>
    %282 = math.tanh %281 : vector<8x64xf32>
    %cst_99 = arith.constant 1.000000e+00 : f32
    %283 = vector.broadcast %cst_99 : f32 to vector<8x64xf32>
    %284 = arith.addf %282, %283 : vector<8x64xf32>
    %cst_100 = arith.constant 5.000000e-01 : f32
    %285 = vector.broadcast %cst_100 : f32 to vector<8x64xf32>
    %286 = arith.mulf %285, %284 : vector<8x64xf32>
    %287 = arith.mulf %276, %253 : vector<8x64xf32>
    %288 = arith.mulf %268, %278 : vector<8x64xf32>
    %289 = arith.addf %287, %288 : vector<8x64xf32>
    %290 = math.tanh %289 : vector<8x64xf32>
    %291 = arith.mulf %286, %290 : vector<8x64xf32>
    %c104 = arith.constant 104 : index
    %c0_101 = arith.constant 0 : index
    %292 = vector.load %arg0[%c104, %c0_101] : memref<192x64xf32, #tpu.memory_space<vmem>>, vector<8x64xf32>
    %293 = arith.mulf %292, %291 : vector<8x64xf32>
    %cst_102 = arith.constant 1.000000e+00 : f32
    %294 = vector.broadcast %cst_102 : f32 to vector<8x64xf32>
    %295 = arith.subf %294, %292 : vector<8x64xf32>
    %296 = arith.mulf %295, %248 : vector<8x64xf32>
    %297 = arith.addf %293, %296 : vector<8x64xf32>
    %298 = arith.mulf %292, %289 : vector<8x64xf32>
    %cst_103 = arith.constant 1.000000e+00 : f32
    %299 = vector.broadcast %cst_103 : f32 to vector<8x64xf32>
    %300 = arith.subf %299, %292 : vector<8x64xf32>
    %301 = arith.mulf %300, %253 : vector<8x64xf32>
    %302 = arith.addf %298, %301 : vector<8x64xf32>
    %303 = vector.extract_strided_slice %293 {offsets = [0, 0], sizes = [8, 32], strides = [1, 1]} : vector<8x64xf32> to vector<8x32xf32>
    %c40_104 = arith.constant 40 : index
    %c0_105 = arith.constant 0 : index
    %304 = vector.load %arg3[%c40_104, %c0_105] : memref<64x64xf32, #tpu.memory_space<vmem>>, vector<8x32xf32>
    tpu.vector_store %arg3[%c40_104, %c0_105], %303 {strides = array<i32>} : memref<64x64xf32, #tpu.memory_space<vmem>>, vector<8x32xf32>,
    %305 = vector.extract_strided_slice %293 {offsets = [0, 32], sizes = [8, 32], strides = [1, 1]} : vector<8x64xf32> to vector<8x32xf32>
    %c16_106 = arith.constant 16 : index
    %c32_107 = arith.constant 32 : index
    %306 = vector.load %arg3[%c16_106, %c32_107] : memref<64x64xf32, #tpu.memory_space<vmem>>, vector<8x32xf32>
    tpu.vector_store %arg3[%c16_106, %c32_107], %305 {strides = array<i32>} : memref<64x64xf32, #tpu.memory_space<vmem>>, vector<8x32xf32>,
    %307 = vector.extract_strided_slice %10 {offsets = [48, 0], sizes = [8, 256], strides = [1, 1]} : vector<64x256xf32> to vector<8x256xf32>
    %cst_108 = arith.constant dense<0.000000e+00> : vector<8x256xf32>
    %308 = tpu.matmul %297, %3, %cst_108 {dimension_numbers = #tpu.dot_dimension_numbers<[1], [0], [0], [1], [0, 0, 1, 1], [], []>} : vector<8x64xf32>, vector<64x256xf32>, vector<8x256xf32> -> vector<8x256xf32>
    %309 = arith.addf %307, %308 : vector<8x256xf32>
    %310 = vector.extract_strided_slice %309 {offsets = [0, 0], sizes = [8, 64], strides = [1, 1]} : vector<8x256xf32> to vector<8x64xf32>
    %cst_109 = arith.constant 5.000000e-01 : f32
    %311 = vector.broadcast %cst_109 : f32 to vector<8x64xf32>
    %312 = arith.mulf %311, %310 : vector<8x64xf32>
    %313 = math.tanh %312 : vector<8x64xf32>
    %cst_110 = arith.constant 1.000000e+00 : f32
    %314 = vector.broadcast %cst_110 : f32 to vector<8x64xf32>
    %315 = arith.addf %313, %314 : vector<8x64xf32>
    %cst_111 = arith.constant 5.000000e-01 : f32
    %316 = vector.broadcast %cst_111 : f32 to vector<8x64xf32>
    %317 = arith.mulf %316, %315 : vector<8x64xf32>
    %318 = vector.extract_strided_slice %309 {offsets = [0, 64], sizes = [8, 64], strides = [1, 1]} : vector<8x256xf32> to vector<8x64xf32>
    %cst_112 = arith.constant 5.000000e-01 : f32
    %319 = vector.broadcast %cst_112 : f32 to vector<8x64xf32>
    %320 = arith.mulf %319, %318 : vector<8x64xf32>
    %321 = math.tanh %320 : vector<8x64xf32>
    %cst_113 = arith.constant 1.000000e+00 : f32
    %322 = vector.broadcast %cst_113 : f32 to vector<8x64xf32>
    %323 = arith.addf %321, %322 : vector<8x64xf32>
    %cst_114 = arith.constant 5.000000e-01 : f32
    %324 = vector.broadcast %cst_114 : f32 to vector<8x64xf32>
    %325 = arith.mulf %324, %323 : vector<8x64xf32>
    %326 = vector.extract_strided_slice %309 {offsets = [0, 128], sizes = [8, 64], strides = [1, 1]} : vector<8x256xf32> to vector<8x64xf32>
    %327 = math.tanh %326 : vector<8x64xf32>
    %328 = vector.extract_strided_slice %309 {offsets = [0, 192], sizes = [8, 64], strides = [1, 1]} : vector<8x256xf32> to vector<8x64xf32>
    %cst_115 = arith.constant 5.000000e-01 : f32
    %329 = vector.broadcast %cst_115 : f32 to vector<8x64xf32>
    %330 = arith.mulf %329, %328 : vector<8x64xf32>
    %331 = math.tanh %330 : vector<8x64xf32>
    %cst_116 = arith.constant 1.000000e+00 : f32
    %332 = vector.broadcast %cst_116 : f32 to vector<8x64xf32>
    %333 = arith.addf %331, %332 : vector<8x64xf32>
    %cst_117 = arith.constant 5.000000e-01 : f32
    %334 = vector.broadcast %cst_117 : f32 to vector<8x64xf32>
    %335 = arith.mulf %334, %333 : vector<8x64xf32>
    %336 = arith.mulf %325, %302 : vector<8x64xf32>
    %337 = arith.mulf %317, %327 : vector<8x64xf32>
    %338 = arith.addf %336, %337 : vector<8x64xf32>
    %339 = math.tanh %338 : vector<8x64xf32>
    %340 = arith.mulf %335, %339 : vector<8x64xf32>
    %c112 = arith.constant 112 : index
    %c0_118 = arith.constant 0 : index
    %341 = vector.load %arg0[%c112, %c0_118] : memref<192x64xf32, #tpu.memory_space<vmem>>, vector<8x64xf32>
    %342 = arith.mulf %341, %340 : vector<8x64xf32>
    %cst_119 = arith.constant 1.000000e+00 : f32
    %343 = vector.broadcast %cst_119 : f32 to vector<8x64xf32>
    %344 = arith.subf %343, %341 : vector<8x64xf32>
    %345 = arith.mulf %344, %297 : vector<8x64xf32>
    %346 = arith.addf %342, %345 : vector<8x64xf32>
    %347 = arith.mulf %341, %338 : vector<8x64xf32>
    %cst_120 = arith.constant 1.000000e+00 : f32
    %348 = vector.broadcast %cst_120 : f32 to vector<8x64xf32>
    %349 = arith.subf %348, %341 : vector<8x64xf32>
    %350 = arith.mulf %349, %302 : vector<8x64xf32>
    %351 = arith.addf %347, %350 : vector<8x64xf32>
    %352 = vector.extract_strided_slice %342 {offsets = [0, 0], sizes = [8, 32], strides = [1, 1]} : vector<8x64xf32> to vector<8x32xf32>
    %c48_121 = arith.constant 48 : index
    %c0_122 = arith.constant 0 : index
    %353 = vector.load %arg3[%c48_121, %c0_122] : memref<64x64xf32, #tpu.memory_space<vmem>>, vector<8x32xf32>
    tpu.vector_store %arg3[%c48_121, %c0_122], %352 {strides = array<i32>} : memref<64x64xf32, #tpu.memory_space<vmem>>, vector<8x32xf32>,
    %354 = vector.extract_strided_slice %342 {offsets = [0, 32], sizes = [8, 32], strides = [1, 1]} : vector<8x64xf32> to vector<8x32xf32>
    %c8_123 = arith.constant 8 : index
    %c32_124 = arith.constant 32 : index
    %355 = vector.load %arg3[%c8_123, %c32_124] : memref<64x64xf32, #tpu.memory_space<vmem>>, vector<8x32xf32>
    tpu.vector_store %arg3[%c8_123, %c32_124], %354 {strides = array<i32>} : memref<64x64xf32, #tpu.memory_space<vmem>>, vector<8x32xf32>,
    %356 = vector.extract_strided_slice %10 {offsets = [56, 0], sizes = [8, 256], strides = [1, 1]} : vector<64x256xf32> to vector<8x256xf32>
    %cst_125 = arith.constant dense<0.000000e+00> : vector<8x256xf32>
    %357 = tpu.matmul %346, %3, %cst_125 {dimension_numbers = #tpu.dot_dimension_numbers<[1], [0], [0], [1], [0, 0, 1, 1], [], []>} : vector<8x64xf32>, vector<64x256xf32>, vector<8x256xf32> -> vector<8x256xf32>
    %358 = arith.addf %356, %357 : vector<8x256xf32>
    %359 = vector.extract_strided_slice %358 {offsets = [0, 0], sizes = [8, 64], strides = [1, 1]} : vector<8x256xf32> to vector<8x64xf32>
    %cst_126 = arith.constant 5.000000e-01 : f32
    %360 = vector.broadcast %cst_126 : f32 to vector<8x64xf32>
    %361 = arith.mulf %360, %359 : vector<8x64xf32>
    %362 = math.tanh %361 : vector<8x64xf32>
    %cst_127 = arith.constant 1.000000e+00 : f32
    %363 = vector.broadcast %cst_127 : f32 to vector<8x64xf32>
    %364 = arith.addf %362, %363 : vector<8x64xf32>
    %cst_128 = arith.constant 5.000000e-01 : f32
    %365 = vector.broadcast %cst_128 : f32 to vector<8x64xf32>
    %366 = arith.mulf %365, %364 : vector<8x64xf32>
    %367 = vector.extract_strided_slice %358 {offsets = [0, 64], sizes = [8, 64], strides = [1, 1]} : vector<8x256xf32> to vector<8x64xf32>
    %cst_129 = arith.constant 5.000000e-01 : f32
    %368 = vector.broadcast %cst_129 : f32 to vector<8x64xf32>
    %369 = arith.mulf %368, %367 : vector<8x64xf32>
    %370 = math.tanh %369 : vector<8x64xf32>
    %cst_130 = arith.constant 1.000000e+00 : f32
    %371 = vector.broadcast %cst_130 : f32 to vector<8x64xf32>
    %372 = arith.addf %370, %371 : vector<8x64xf32>
    %cst_131 = arith.constant 5.000000e-01 : f32
    %373 = vector.broadcast %cst_131 : f32 to vector<8x64xf32>
    %374 = arith.mulf %373, %372 : vector<8x64xf32>
    %375 = vector.extract_strided_slice %358 {offsets = [0, 128], sizes = [8, 64], strides = [1, 1]} : vector<8x256xf32> to vector<8x64xf32>
    %376 = math.tanh %375 : vector<8x64xf32>
    %377 = vector.extract_strided_slice %358 {offsets = [0, 192], sizes = [8, 64], strides = [1, 1]} : vector<8x256xf32> to vector<8x64xf32>
    %cst_132 = arith.constant 5.000000e-01 : f32
    %378 = vector.broadcast %cst_132 : f32 to vector<8x64xf32>
    %379 = arith.mulf %378, %377 : vector<8x64xf32>
    %380 = math.tanh %379 : vector<8x64xf32>
    %cst_133 = arith.constant 1.000000e+00 : f32
    %381 = vector.broadcast %cst_133 : f32 to vector<8x64xf32>
    %382 = arith.addf %380, %381 : vector<8x64xf32>
    %cst_134 = arith.constant 5.000000e-01 : f32
    %383 = vector.broadcast %cst_134 : f32 to vector<8x64xf32>
    %384 = arith.mulf %383, %382 : vector<8x64xf32>
    %385 = arith.mulf %374, %351 : vector<8x64xf32>
    %386 = arith.mulf %366, %376 : vector<8x64xf32>
    %387 = arith.addf %385, %386 : vector<8x64xf32>
    %388 = math.tanh %387 : vector<8x64xf32>
    %389 = arith.mulf %384, %388 : vector<8x64xf32>
    %c120 = arith.constant 120 : index
    %c0_135 = arith.constant 0 : index
    %390 = vector.load %arg0[%c120, %c0_135] : memref<192x64xf32, #tpu.memory_space<vmem>>, vector<8x64xf32>
    %391 = arith.mulf %390, %389 : vector<8x64xf32>
    %392 = vector.extract_strided_slice %391 {offsets = [0, 0], sizes = [8, 32], strides = [1, 1]} : vector<8x64xf32> to vector<8x32xf32>
    %c56_136 = arith.constant 56 : index
    %c0_137 = arith.constant 0 : index
    %393 = vector.load %arg3[%c56_136, %c0_137] : memref<64x64xf32, #tpu.memory_space<vmem>>, vector<8x32xf32>
    tpu.vector_store %arg3[%c56_136, %c0_137], %392 {strides = array<i32>} : memref<64x64xf32, #tpu.memory_space<vmem>>, vector<8x32xf32>,
    %394 = vector.extract_strided_slice %391 {offsets = [0, 32], sizes = [8, 32], strides = [1, 1]} : vector<8x64xf32> to vector<8x32xf32>
    %c0_138 = arith.constant 0 : index
    %c32_139 = arith.constant 32 : index
    %395 = vector.load %arg3[%c0_138, %c32_139] : memref<64x64xf32, #tpu.memory_space<vmem>>, vector<8x32xf32>
    tpu.vector_store %arg3[%c0_138, %c32_139], %394 {strides = array<i32>} : memref<64x64xf32, #tpu.memory_space<vmem>>, vector<8x32xf32>,
    %c0_140 = arith.constant 0 : index
    %c0_141 = arith.constant 0 : index
    %396 = vector.load %arg3[%c0_140, %c0_141] : memref<64x64xf32, #tpu.memory_space<vmem>>, vector<64x64xf32>
    %cst_142 = arith.constant dense<0.000000e+00> : vector<64x256xf32>
    %397 = tpu.matmul %396, %4, %cst_142 {dimension_numbers = #tpu.dot_dimension_numbers<[1], [0], [0], [1], [0, 0, 1, 1], [], []>} : vector<64x64xf32>, vector<64x256xf32>, vector<64x256xf32> -> vector<64x256xf32>
    %398 = vector.broadcast %6 : vector<1x256xf32> to vector<64x256xf32>
    %399 = arith.addf %397, %398 : vector<64x256xf32>
    %400 = vector.extract_strided_slice %399 {offsets = [0, 0], sizes = [64, 64], strides = [1, 1]} : vector<64x256xf32> to vector<64x64xf32>
    %401 = vector.extract_strided_slice %399 {offsets = [0, 64], sizes = [64, 64], strides = [1, 1]} : vector<64x256xf32> to vector<64x64xf32>
    %402 = vector.extract_strided_slice %399 {offsets = [0, 128], sizes = [64, 64], strides = [1, 1]} : vector<64x256xf32> to vector<64x64xf32>
    %cst_143 = arith.constant 0.000000e+00 : f32
    %403 = vector.broadcast %cst_143 : f32 to vector<64x8xf32>
    %404 = vector.broadcast %7 : vector<1x8xf32> to vector<64x8xf32>
    %405 = arith.addf %403, %404 : vector<64x8xf32>
    %406 = vector.extract_strided_slice %400 {offsets = [0, 0], sizes = [64, 32], strides = [1, 1]} : vector<64x64xf32> to vector<64x32xf32>
    %407 = vector.extract_strided_slice %401 {offsets = [0, 0], sizes = [64, 32], strides = [1, 1]} : vector<64x64xf32> to vector<64x32xf32>
    %408 = vector.extract_strided_slice %402 {offsets = [0, 0], sizes = [64, 32], strides = [1, 1]} : vector<64x64xf32> to vector<64x32xf32>
    %cst_144 = arith.constant dense<0.000000e+00> : vector<64x64xf32>
    %409 = tpu.matmul %406, %407, %cst_144 {dimension_numbers = #tpu.dot_dimension_numbers<[1], [1], [0], [0], [0, 0, 1, 0], [], []>} : vector<64x32xf32>, vector<64x32xf32>, vector<64x64xf32> -> vector<64x64xf32>
    %410 = arith.addf %409, %1 : vector<64x64xf32>
    %cst_145 = arith.constant dense<0xFF800000> : vector<64xf32>
    %411 = vector.multi_reduction <maximumf>, %410, %cst_145 [1] : vector<64x64xf32> to vector<64xf32>
    %412 = vector.shape_cast %411 : vector<64xf32> to vector<64x1xf32>
    %413 = vector.broadcast %412 : vector<64x1xf32> to vector<64x64xf32>
    %414 = arith.subf %410, %413 : vector<64x64xf32>
    %415 = math.exp %414 : vector<64x64xf32>
    %cst_146 = arith.constant dense<0.000000e+00> : vector<64xf32>
    %416 = vector.multi_reduction <add>, %415, %cst_146 [1] : vector<64x64xf32> to vector<64xf32>
    %417 = vector.shape_cast %416 : vector<64xf32> to vector<64x1xf32>
    %418 = tpu.reciprocal %417 {approx = true} : vector<64x1xf32> -> vector<64x1xf32>
    %419 = vector.broadcast %418 : vector<64x1xf32> to vector<64x64xf32>
    %420 = arith.mulf %415, %419 : vector<64x64xf32>
    %cst_147 = arith.constant dense<0.000000e+00> : vector<64x32xf32>
    %421 = tpu.matmul %420, %408, %cst_147 {dimension_numbers = #tpu.dot_dimension_numbers<[1], [0], [0], [1], [0, 0, 1, 1], [], []>} : vector<64x64xf32>, vector<64x32xf32>, vector<64x32xf32> -> vector<64x32xf32>
    %c192 = arith.constant 192 : index
    %c0_148 = arith.constant 0 : index
    %422 = vector.load %arg1[%c192, %c0_148] : memref<264x256xf32, #tpu.memory_space<vmem>>, vector<32x8xf32>
    %cst_149 = arith.constant dense<0.000000e+00> : vector<64x8xf32>
    %423 = tpu.matmul %421, %422, %cst_149 {dimension_numbers = #tpu.dot_dimension_numbers<[1], [0], [0], [1], [0, 0, 1, 1], [], []>} : vector<64x32xf32>, vector<32x8xf32>, vector<64x8xf32> -> vector<64x8xf32>
    %424 = arith.addf %405, %423 : vector<64x8xf32>
    %425 = vector.extract_strided_slice %400 {offsets = [0, 32], sizes = [64, 32], strides = [1, 1]} : vector<64x64xf32> to vector<64x32xf32>
    %426 = vector.extract_strided_slice %401 {offsets = [0, 32], sizes = [64, 32], strides = [1, 1]} : vector<64x64xf32> to vector<64x32xf32>
    %427 = vector.extract_strided_slice %402 {offsets = [0, 32], sizes = [64, 32], strides = [1, 1]} : vector<64x64xf32> to vector<64x32xf32>
    %cst_150 = arith.constant dense<0.000000e+00> : vector<64x64xf32>
    %428 = tpu.matmul %425, %426, %cst_150 {dimension_numbers = #tpu.dot_dimension_numbers<[1], [1], [0], [0], [0, 0, 1, 0], [], []>} : vector<64x32xf32>, vector<64x32xf32>, vector<64x64xf32> -> vector<64x64xf32>
    %429 = arith.addf %428, %1 : vector<64x64xf32>
    %cst_151 = arith.constant dense<0xFF800000> : vector<64xf32>
    %430 = vector.multi_reduction <maximumf>, %429, %cst_151 [1] : vector<64x64xf32> to vector<64xf32>
    %431 = vector.shape_cast %430 : vector<64xf32> to vector<64x1xf32>
    %432 = vector.broadcast %431 : vector<64x1xf32> to vector<64x64xf32>
    %433 = arith.subf %429, %432 : vector<64x64xf32>
    %434 = math.exp %433 : vector<64x64xf32>
    %cst_152 = arith.constant dense<0.000000e+00> : vector<64xf32>
    %435 = vector.multi_reduction <add>, %434, %cst_152 [1] : vector<64x64xf32> to vector<64xf32>
    %436 = vector.shape_cast %435 : vector<64xf32> to vector<64x1xf32>
    %437 = tpu.reciprocal %436 {approx = true} : vector<64x1xf32> -> vector<64x1xf32>
    %438 = vector.broadcast %437 : vector<64x1xf32> to vector<64x64xf32>
    %439 = arith.mulf %434, %438 : vector<64x64xf32>
    %cst_153 = arith.constant dense<0.000000e+00> : vector<64x32xf32>
    %440 = tpu.matmul %439, %427, %cst_153 {dimension_numbers = #tpu.dot_dimension_numbers<[1], [0], [0], [1], [0, 0, 1, 1], [], []>} : vector<64x64xf32>, vector<64x32xf32>, vector<64x32xf32> -> vector<64x32xf32>
    %c224 = arith.constant 224 : index
    %c0_154 = arith.constant 0 : index
    %441 = vector.load %arg1[%c224, %c0_154] : memref<264x256xf32, #tpu.memory_space<vmem>>, vector<32x8xf32>
    %cst_155 = arith.constant dense<0.000000e+00> : vector<64x8xf32>
    %442 = tpu.matmul %440, %441, %cst_155 {dimension_numbers = #tpu.dot_dimension_numbers<[1], [0], [0], [1], [0, 0, 1, 1], [], []>} : vector<64x32xf32>, vector<32x8xf32>, vector<64x8xf32> -> vector<64x8xf32>
    %443 = arith.addf %424, %442 : vector<64x8xf32>
    %cst_156 = arith.constant 5.000000e-01 : f32
    %444 = vector.broadcast %cst_156 : f32 to vector<64x8xf32>
    %445 = arith.mulf %444, %443 : vector<64x8xf32>
    %446 = math.tanh %445 : vector<64x8xf32>
    %cst_157 = arith.constant 1.000000e+00 : f32
    %447 = vector.broadcast %cst_157 : f32 to vector<64x8xf32>
    %448 = arith.addf %446, %447 : vector<64x8xf32>
    %cst_158 = arith.constant 5.000000e-01 : f32
    %449 = vector.broadcast %cst_158 : f32 to vector<64x8xf32>
    %450 = arith.mulf %449, %448 : vector<64x8xf32>
    %c0_159 = arith.constant 0 : index
    %c0_160 = arith.constant 0 : index
    %451 = vector.load %arg2[%c0_159, %c0_160] : memref<64x8xf32, #tpu.memory_space<vmem>>, vector<64x8xf32>
    tpu.vector_store %arg2[%c0_159, %c0_160], %450 {strides = array<i32>} : memref<64x8xf32, #tpu.memory_space<vmem>>, vector<64x8xf32>,
    return
  }
}

</mosaic_0001>

<bundles_post_ra>
// kernel: tagger_forward.1
= control target key start
LH: loop header
LB: loop body
LE: loop exit
PB: predicated region body
PF: predicated region fallthrough
CT: control target
= control target key end

     0   :  { %v3265_v3 = vmov 0.0   ;;  %vm91_vm0 = vcmask 523264   ;;  %v81_v57 = vlaneseq  ;;  %s3266_s7 = smov 64   ;;  %vm338_vm1 = vcmask 261120   ;;  %s3267_s22 = smov 32   ;;  %s4101_s1 = inlined_call_operand.vmem [shape: f32[264,256], index: 1, kind: input, shape index: {}]   ;;  %s4102_s0 = inlined_call_operand.vmem [shape: f32[192,64], index: 0, kind: input, shape index: {}]   ;;  %s4103_s2 = inlined_call_operand.vmem [shape: f32[64,8], index: 2, kind: output, shape index: {}]  }
   0x1   :  { %v28_v0 = vld [vmem:[%s4101_s1 + $0x8] sm:$0xff]  ;;  %v30_v1 = vld [vmem:[%s4101_s1 + $0x18] sm:$0xff]  ;;  %v27_v2 = vld [vmem:[%s4101_s1] sm:$0xff]  ;;  %180 = vmatprep.mubr.f32.mxu0 %v3265_v3  ;;  %1251 = vmatprep.mubr.f32.mxu1 %v3265_v3  ;;  %vm340_vm2 = vcmask 523520   ;;  %s3268_s23 = smov 96   ;;  %vm2411_vm4 = vcmask 64512  }
   0x2   :  { %v2753_v4 = vpack.c.bf16 %v30_v1, %v28_v0  ;;  %v29_v5 = vld [vmem:[%s4101_s1 + $0x10] sm:$0xff]  ;;  %v32_v6 = vld [vmem:[%s4101_s1 + $0x28] sm:$0xff]  ;;  %v34_v7 = vld [vmem:[%s4101_s1 + $0x38] sm:$0xff]  ;;  %v3457_v58 = vshrl.u32 %v81_v57, 7 }
   0x3   :  { %v2755_v8 = vpack.c.bf16 %v29_v5, %v27_v2  ;;  %v2757_v9 = vpack.c.bf16 %v34_v7, %v32_v6  ;;  %v31_v10 = vld [vmem:[%s4101_s1 + $0x20] sm:$0xff]  ;;  %v33_v11 = vld [vmem:[%s4101_s1 + $0x30] sm:$0xff]  ;;  %v36_v12 = vld [vmem:[%s4101_s1 + $0x48] sm:$0xff] }
   0x4   :  { %2754 = vmatprep.subr.bf16.mxu0 %v2753_v4  ;;  %v38_v13 = vld [vmem:[%s4101_s1 + $0x58] sm:$0xff]  ;;  %v2759_v14 = vpack.c.bf16 %v33_v11, %v31_v10  ;;  %v35_v16 = vld [vmem:[%s4101_s1 + $0x40] sm:$0xff]  ;;  %v37_v17 = vld [vmem:[%s4101_s1 + $0x50] sm:$0xff]  ;;  %v83_v59 = vsub.s32 0, %v3457_v58  ;;  %v87_v62 = vsub.s32 1, %v3457_v58 }
   0x5   :  { %2756 = vmatpush1.bf16.msra.mxu0 %v2755_v8  ;;  %v2761_v15 = vpack.c.bf16 %v38_v13, %v36_v12  ;;  %v40_v18 = vld [vmem:[%s4101_s1 + $0x68] sm:$0xff]  ;;  %v42_v19 = vld [vmem:[%s4101_s1 + $0x78] sm:$0xff]  ;;  %v2763_v20 = vpack.c.bf16 %v37_v17, %v35_v16  ;;  %v39_v22 = vld [vmem:[%s4101_s1 + $0x60] sm:$0xff] }
   0x6   :  { %2758 = vmatprep.subr.bf16.mxu0 %v2757_v9  ;;  %v2765_v21 = vpack.c.bf16 %v42_v19, %v40_v18  ;;  %v41_v23 = vld [vmem:[%s4101_s1 + $0x70] sm:$0xff]  ;;  %v44_v24 = vld [vmem:[%s4101_s1 + $0x88] sm:$0xff]  ;;  %v46_v25 = vld [vmem:[%s4101_s1 + $0x98] sm:$0xff] }
   0x7   :  { %v2767_v26 = vpack.c.bf16 %v41_v23, %v39_v22  ;;  %v3340_v27 = vpack.c.bf16 %v46_v25, %v44_v24  ;;  %v43_v28 = vld [vmem:[%s4101_s1 + $0x80] sm:$0xff]  ;;  %v45_v29 = vld [vmem:[%s4101_s1 + $0x90] sm:$0xff]  ;;  %v48_v30 = vld [vmem:[%s4101_s1 + $0xa8] sm:$0xff] }
   0x8   :  { %v50_v31 = vld [vmem:[%s4101_s1 + $0xb8] sm:$0xff]  ;;  %v11_v32 = vld [vmem:[%s4102_s0] sm:$0xff]  ;;  %v3357_v33 = vpack.c.bf16 %v45_v29, %v43_v28  ;;  %v49_v36 = vld [vmem:[%s4101_s1 + $0xb0] sm:$0xff] }
   0x9   :  { %2760 = vmatpush1.bf16.msra.mxu0 %v2759_v14  ;;  %v3360_v34 = vpack.c.bf16 %v50_v31, %v48_v30  ;;  %v47_v35 = vld [vmem:[%s4101_s1 + $0xa0] sm:$0xff]  ;;  %v52_v37 = vld [vmem:[%s4101_s1 + $0xc8] sm:$0xff]  ;;  %v54_v38 = vld [vmem:[%s4101_s1 + $0xd8] sm:$0xff] }
   0xa   :  { %2762 = vmatprep.subr.bf16.mxu0 %v2761_v15  ;;  %v12_v39 = vld [vmem:[%s4102_s0 + $0x8] sm:$0xff]  ;;  %v3380_v40 = vpack.c.bf16 %v49_v36, %v47_v35  ;;  %v3383_v41 = vpack.c.bf16 %v54_v38, %v52_v37  ;;  %v51_v42 = vld [vmem:[%s4101_s1 + $0xc0] sm:$0xff]  ;;  %v53_v43 = vld [vmem:[%s4101_s1 + $0xd0] sm:$0xff] }
   0xb   :  { %v56_v44 = vld [vmem:[%s4101_s1 + $0xe8] sm:$0xff]  ;;  %v58_v45 = vld [vmem:[%s4101_s1 + $0xf8] sm:$0xff]  ;;  %v13_v46 = vld [vmem:[%s4102_s0 + $0x10] sm:$0xff]  ;;  %v3403_v47 = vpack.c.bf16 %v53_v43, %v51_v42 }
   0xc   :  { %v3406_v48 = vpack.c.bf16 %v58_v45, %v56_v44  ;;  %v55_v49 = vld [vmem:[%s4101_s1 + $0xe0] sm:$0xff]  ;;  %v57_v50 = vld [vmem:[%s4101_s1 + $0xf0] sm:$0xff]  ;;  %v14_v51 = vld [vmem:[%s4102_s0 + $0x18] sm:$0xff] }
   0xd   :  { %2764 = vmatpush1.bf16.msra.mxu0 %v2763_v20  ;;  %v3420_v52 = vpack.c.bf16 %v57_v50, %v55_v49  ;;  %v15_v53 = vld [vmem:[%s4102_s0 + $0x20] sm:$0xff]  ;;  %v16_v54 = vld [vmem:[%s4102_s0 + $0x28] sm:$0xff]  ;;  %v17_v55 = vld [vmem:[%s4102_s0 + $0x30] sm:$0xff] }
   0xe   :  { %2766 = vmatprep.subr.bf16.mxu0 %v2765_v21  ;;  %v18_v56 = vld [vmem:[%s4102_s0 + $0x38] sm:$0xff]  ;;  %v2424_v60 = vld [vmem:[%s4101_s1 + $0x200] ss:$8 sm:$0x3]  ;;  %vm3766_vm3 = vmpackc.low %vm338_vm1, %vm338_vm1 }
   0xf   :  { %v3465_v61 = vrot.slane %v2424_v60, %v83_v59  ;;  %v3471_v1 = vrot.slane %v2424_v60, %v87_v62  ;;  %v323_v20 = vld [vmem:[%s4102_s0 + $0x40] sm:$0xff]  ;;  %v440_v57 = vld [vmem:[%s4102_s0 + $0x48] sm:$0xff] }
  0x10   :  { %v329_v21 = vsub.f32 1.0, %v323_v20  ;;  %v446_v60 = vsub.f32 1.0, %v440_v57 }
  0x11   :  { %2768 = vmatpush1.bf16.msra.mxu0 %v2767_v26 }
  0x12   :  { %2770 = vmatprep.subr.bf16.mxu0 %v3340_v27  ;;  %v330_v22 = vmul.f32 0.0, %v329_v21 }
  0x14   :  { %2426 = vmatmul.mubr.msk.f32.vlgmr.msra.gmra.mrb[0].mxu0 %vm91_vm0, %v11_v32 }
  0x15   :  { %2772 = vmatpush1.bf16.msra.mxu0 %v3357_v33  ;;  %186 = vmatprep.mubr.f32.mxu0 %v3265_v3 }
  0x16   :  { %2774 = vmatprep.subr.bf16.mxu0 %v3360_v34 }
  0x18   :  { %2427 = vmatmul.mubr.msk.f32.gmra.mrb[2].mxu0 %vm91_vm0, %v12_v39 }
  0x19   :  { %192 = vmatprep.mubr.f32.mxu0 %v3265_v3  ;;  %2776 = vmatpush1.bf16.msra.mxu0 %v3380_v40 }
  0x1a   :  { %2778 = vmatprep.subr.bf16.mxu0 %v3383_v41 }
  0x1c   :  { %2428 = vmatmul.mubr.msk.f32.gmra.mrb[4].mxu0 %vm91_vm0, %v13_v46 }
  0x1d   :  { %198 = vmatprep.mubr.f32.mxu0 %v3265_v3  ;;  %2780 = vmatpush1.bf16.msra.mxu0 %v3403_v47 }
  0x1e   :  { %2782 = vmatprep.subr.bf16.mxu0 %v3406_v48 }
  0x20   :  { %2429 = vmatmul.mubr.msk.f32.gmra.mrb[6].mxu0 %vm91_vm0, %v14_v51 }
  0x21   :  { %204 = vmatprep.mubr.f32.mxu0 %v3265_v3  ;;  %2784 = vmatpush1.bf16.msra.mxu0 %v3420_v52 }
  0x22   :  { %2786 = vmatprep.subr.bf16.mxu0 %v3340_v27 }
  0x24   :  { %2430 = vmatmul.mubr.msk.f32.gmra.mrb[8].mxu0 %vm91_vm0, %v15_v53 }
  0x25   :  { %210 = vmatprep.mubr.f32.mxu0 %v3265_v3 }
  0x28   :  { %2431 = vmatmul.mubr.msk.f32.gmra.mrb[10].mxu0 %vm91_vm0, %v16_v54 }
  0x29   :  { %216 = vmatprep.mubr.f32.mxu0 %v3265_v3 }
  0x2c   :  { %2432 = vmatmul.mubr.msk.f32.gmra.mrb[12].mxu0 %vm91_vm0, %v17_v55 }
  0x2d   :  { %222 = vmatprep.mubr.f32.mxu0 %v3265_v3 }
  0x30   :  { %2433 = vmatmul.mubr.msk.f32.gmra.mrb[14].mxu0 %vm91_vm0, %v18_v56 }
  0x31   :  { %296 = vmatprep.mubr.f32.mxu0 %v3265_v3 }
  0x34   :  { %297 = vmatmul.mubr.f32.vlgmr.msra.gmra.mrb[0].mxu0 %v3265_v3 }
  0x35   :  { %2788 = vmatpush1.bf16.msra.mxu0 %v3357_v33  ;;  %409 = vmatprep.mubr.f32.mxu0 %v3265_v3 }
  0x36   :  { %2790 = vmatprep.subr.bf16.mxu0 %v3360_v34 }
  0x39   :  { %2792 = vmatpush1.bf16.msra.mxu0 %v3380_v40 }
  0x3a   :  { %2794 = vmatprep.subr.bf16.mxu0 %v3383_v41 }
  0x3d   :  { %2796 = vmatpush1.bf16.msra.mxu0 %v3403_v47 }
  0x3e   :  { %2798 = vmatprep.subr.bf16.mxu0 %v3406_v48 }
  0x41   :  { %2800 = vmatpush1.bf16.msra.mxu0 %v3420_v52 }
  0x42   :  { %2802 = vmatprep.subr.bf16.mxu0 %v3340_v27 }
 0x107   :  { %v298_v63 = vpop.f32.mrb[0].mxu0 }
 0x108   :  { %v3009_v0 = vadd.f32 %v298_v63, %v3465_v61  ;;  %v300_v2 = vpop.f32.mrb[1].mxu0 }
 0x109   :  { %v3010_v5 = vadd.f32 %v300_v2, %v3471_v1 }
 0x10a   :  { %v305_v4 = vmul.f32 0.5, %v3009_v0 }
 0x10b   :  { %v310_v11 = vmul.f32 0.5, %v3010_v5 }
 0x10c   :  { %3121 = vtanh.f32 %v305_v4 }
 0x10d   :  { %3123 = vtanh.f32 %v3010_v5 }
 0x10e   :  { %3125 = vtanh.f32 %v310_v11 }
 0x116   :  { %v3122_v6 = vpop.eup %3121 }
 0x117   :  { %v307_v7 = vadd.f32 1.0, %v3122_v6  ;;  %v3124_v9 = vpop.eup %3123 }
 0x118   :  { %v3126_v15 = vpop.eup %3125 }
 0x119   :  { %v308_v8 = vmul.f32 0.5, %v307_v7  ;;  %v312_v16 = vadd.f32 1.0, %v3126_v15 }
 0x11b   :  { %v315_v10 = vmul.f32 %v3124_v9, %v308_v8  ;;  %v314_v12 = vmul.f32 0.0, %v308_v8  ;;  %v313_v17 = vmul.f32 0.5, %v312_v16 }
 0x11d   :  { %317 = vrot.lane.b32.xlu0 %v315_v10, %s3266_s7 }
 0x18f   :  { %v318_v13 = vpop.permute.xlu0 %317 }
 0x190   :  { %v320_v14 = vadd.f32 %v318_v13, %v314_v12 }
 0x192   :  { %3127 = vtanh.f32 %v320_v14  ;;  %333 = vrot.lane.b32.xlu1 %v320_v14, %s3266_s7 }
 0x19c   :  { %v3128_v18 = vpop.eup %3127 }
 0x19d   :  { %v322_v19 = vmul.f32 %v3128_v18, %v313_v17 }
 0x19f   :  { %325 = vrot.lane.b32.xlu0 %v322_v19, %s3266_s7 }
 0x204   :  { %v334_v23 = vpop.permute.xlu1 %333 }
 0x205   :  { %v336_v24 = vmul.f32 %v334_v23, %v323_v20 }
 0x207   :  { %v337_v25 = vadd.f32 %v336_v24, %v330_v22 }
 0x209   :  { %428 = vrot.lane.b32.xlu1 %v337_v25, %s3266_s7  ;;  %v454_v0 = vmul.f32 %v446_v60, %v337_v25 }
 0x211   :  { %v326_v26 = vpop.permute.xlu0 %325 }
 0x212   :  { %v328_v28 = vmul.f32 %v326_v26, %v323_v20 }
 0x214   :  { %v331_v29 = vadd.f32 %v330_v22, %v328_v28  ;;  %339 = vst.msk [vmem:[#allocation2] sm:$0xff] %vm338_vm1, %v328_v28 }
 0x215   :  { %341 = vst.msk [vmem:[#allocation2 + $0x38] sm:$0xff] %vm340_vm2, %v328_v28 }
 0x216   :  { %2434 = vmatmul.mubr.msk.f32.vlgmr.msra.gmra.mrb[2].mxu0 %vm91_vm0, %v331_v29  ;;  %v447_v6 = vmul.f32 %v446_v60, %v331_v29 }
 0x217   :  { %2804 = vmatpush1.bf16.msra.mxu0 %v3357_v33  ;;  %525 = vmatprep.mubr.f32.mxu0 %v3265_v3 }
 0x218   :  { %2806 = vmatprep.subr.bf16.mxu0 %v3360_v34 }
 0x21b   :  { %2808 = vmatpush1.bf16.msra.mxu0 %v3380_v40 }
 0x21c   :  { %2810 = vmatprep.subr.bf16.mxu0 %v3383_v41 }
 0x21f   :  { %2812 = vmatpush1.bf16.msra.mxu0 %v3403_v47 }
 0x220   :  { %2814 = vmatprep.subr.bf16.mxu0 %v3406_v48 }
 0x223   :  { %2816 = vmatpush1.bf16.msra.mxu0 %v3420_v52 }
 0x224   :  { %2818 = vmatprep.subr.bf16.mxu0 %v3340_v27 }
 0x27b   :  { %v429_v45 = vpop.permute.xlu1 %428 }
 0x2e9   :  { %v411_v30 = vpop.f32.mrb[2].mxu0 }
 0x2ea   :  { %v3011_v31 = vadd.f32 %v411_v30, %v3465_v61  ;;  %v413_v32 = vpop.f32.mrb[3].mxu0  ;;  %v556_v30 = vld [vmem:[%s4102_s0 + $0x50] sm:$0xff] }
 0x2eb   :  { %v3012_v36 = vadd.f32 %v413_v32, %v3471_v1 }
 0x2ec   :  { %v418_v35 = vmul.f32 0.5, %v3011_v31  ;;  %v562_v31 = vsub.f32 1.0, %v556_v30 }
 0x2ed   :  { %v423_v44 = vmul.f32 0.5, %v3012_v36 }
 0x2ee   :  { %3129 = vtanh.f32 %v418_v35 }
 0x2ef   :  { %3131 = vtanh.f32 %v3012_v36 }
 0x2f0   :  { %3133 = vtanh.f32 %v423_v44 }
 0x2f8   :  { %v3130_v37 = vpop.eup %3129 }
 0x2f9   :  { %v420_v38 = vadd.f32 1.0, %v3130_v37  ;;  %v3132_v42 = vpop.eup %3131 }
 0x2fa   :  { %v3134_v51 = vpop.eup %3133 }
 0x2fb   :  { %v421_v39 = vmul.f32 0.5, %v420_v38  ;;  %v425_v53 = vadd.f32 1.0, %v3134_v51 }
 0x2fd   :  { %v432_v43 = vmul.f32 %v3132_v42, %v421_v39  ;;  %v431_v46 = vmul.f32 %v429_v45, %v421_v39  ;;  %v426_v54 = vmul.f32 0.5, %v425_v53 }
 0x2ff   :  { %434 = vrot.lane.b32.xlu0 %v432_v43, %s3266_s7 }
 0x371   :  { %v435_v49 = vpop.permute.xlu0 %434 }
 0x372   :  { %v437_v50 = vadd.f32 %v435_v49, %v431_v46 }
 0x374   :  { %3135 = vtanh.f32 %v437_v50  ;;  %450 = vrot.lane.b32.xlu0 %v437_v50, %s3266_s7 }
 0x37e   :  { %v3136_v55 = vpop.eup %3135 }
 0x37f   :  { %v439_v56 = vmul.f32 %v3136_v55, %v426_v54 }
 0x381   :  { %442 = vrot.lane.b32.xlu1 %v439_v56, %s3266_s7 }
 0x3e6   :  { %v451_v63 = vpop.permute.xlu0 %450 }
 0x3e7   :  { %v453_v2 = vmul.f32 %v451_v63, %v440_v57 }
 0x3e9   :  { %v455_v4 = vadd.f32 %v454_v0, %v453_v2 }
 0x3eb   :  { %544 = vrot.lane.b32.xlu1 %v455_v4, %s3266_s7  ;;  %v570_v35 = vmul.f32 %v562_v31, %v455_v4 }
 0x3f3   :  { %v443_v5 = vpop.permute.xlu1 %442 }
 0x3f4   :  { %v445_v7 = vmul.f32 %v443_v5, %v440_v57 }
 0x3f6   :  { %v448_v8 = vadd.f32 %v447_v6, %v445_v7  ;;  %456 = vst.msk [vmem:[#allocation2 + $0x8] sm:$0xff] %vm338_vm1, %v445_v7 }
 0x3f7   :  { %457 = vst.msk [vmem:[#allocation2 + $0x30] sm:$0xff] %vm340_vm2, %v445_v7 }
 0x3f8   :  { %2435 = vmatmul.mubr.msk.f32.vlgmr.msra.gmra.mrb[4].mxu0 %vm91_vm0, %v448_v8  ;;  %v563_v39 = vmul.f32 %v562_v31, %v448_v8 }
 0x3f9   :  { %2820 = vmatpush1.bf16.msra.mxu0 %v3357_v33  ;;  %641 = vmatprep.mubr.f32.mxu0 %v3265_v3 }
 0x3fa   :  { %2822 = vmatprep.subr.bf16.mxu0 %v3360_v34 }
 0x3fd   :  { %2824 = vmatpush1.bf16.msra.mxu0 %v3380_v40 }
 0x3fe   :  { %2826 = vmatprep.subr.bf16.mxu0 %v3383_v41 }
 0x401   :  { %2828 = vmatpush1.bf16.msra.mxu0 %v3403_v47 }
 0x402   :  { %2830 = vmatprep.subr.bf16.mxu0 %v3406_v48 }
 0x405   :  { %2832 = vmatpush1.bf16.msra.mxu0 %v3420_v52 }
 0x406   :  { %2834 = vmatprep.subr.bf16.mxu0 %v3340_v27 }
 0x45d   :  { %v545_v20 = vpop.permute.xlu1 %544 }
 0x4cb   :  { %v527_v9 = vpop.f32.mrb[4].mxu0 }
 0x4cc   :  { %v3013_v10 = vadd.f32 %v527_v9, %v3465_v61  ;;  %v529_v11 = vpop.f32.mrb[5].mxu0  ;;  %v672_v9 = vld [vmem:[%s4102_s0 + $0x58] sm:$0xff] }
 0x4cd   :  { %v3014_v13 = vadd.f32 %v529_v11, %v3471_v1 }
 0x4ce   :  { %v534_v12 = vmul.f32 0.5, %v3013_v10  ;;  %v678_v10 = vsub.f32 1.0, %v672_v9 }
 0x4cf   :  { %v539_v19 = vmul.f32 0.5, %v3014_v13 }
 0x4d0   :  { %3137 = vtanh.f32 %v534_v12 }
 0x4d1   :  { %3139 = vtanh.f32 %v3014_v13 }
 0x4d2   :  { %3141 = vtanh.f32 %v539_v19 }
 0x4da   :  { %v3138_v14 = vpop.eup %3137 }
 0x4db   :  { %v536_v15 = vadd.f32 1.0, %v3138_v14  ;;  %v3140_v17 = vpop.eup %3139 }
 0x4dc   :  { %v3142_v24 = vpop.eup %3141 }
 0x4dd   :  { %v537_v16 = vmul.f32 0.5, %v536_v15  ;;  %v541_v25 = vadd.f32 1.0, %v3142_v24 }
 0x4df   :  { %v548_v18 = vmul.f32 %v3140_v17, %v537_v16  ;;  %v547_v21 = vmul.f32 %v545_v20, %v537_v16  ;;  %v542_v26 = vmul.f32 0.5, %v541_v25 }
 0x4e1   :  { %550 = vrot.lane.b32.xlu0 %v548_v18, %s3266_s7 }
 0x553   :  { %v551_v22 = vpop.permute.xlu0 %550 }
 0x554   :  { %v553_v23 = vadd.f32 %v551_v22, %v547_v21 }
 0x556   :  { %3143 = vtanh.f32 %v553_v23  ;;  %566 = vrot.lane.b32.xlu0 %v553_v23, %s3266_s7 }
 0x560   :  { %v3144_v28 = vpop.eup %3143 }
 0x561   :  { %v555_v29 = vmul.f32 %v3144_v28, %v542_v26 }
 0x563   :  { %558 = vrot.lane.b32.xlu1 %v555_v29, %s3266_s7 }
 0x5c8   :  { %v567_v32 = vpop.permute.xlu0 %566 }
 0x5c9   :  { %v569_v36 = vmul.f32 %v567_v32, %v556_v30 }
 0x5cb   :  { %v571_v37 = vadd.f32 %v570_v35, %v569_v36 }
 0x5cd   :  { %660 = vrot.lane.b32.xlu1 %v571_v37, %s3266_s7  ;;  %v686_v12 = vmul.f32 %v678_v10, %v571_v37 }
 0x5d5   :  { %v559_v38 = vpop.permute.xlu1 %558 }
 0x5d6   :  { %v561_v42 = vmul.f32 %v559_v38, %v556_v30 }
 0x5d8   :  { %v564_v43 = vadd.f32 %v563_v39, %v561_v42  ;;  %572 = vst.msk [vmem:[#allocation2 + $0x10] sm:$0xff] %vm338_vm1, %v561_v42 }
 0x5d9   :  { %573 = vst.msk [vmem:[#allocation2 + $0x28] sm:$0xff] %vm340_vm2, %v561_v42 }
 0x5da   :  { %2436 = vmatmul.mubr.msk.f32.vlgmr.msra.gmra.mrb[6].mxu0 %vm91_vm0, %v564_v43  ;;  %v679_v16 = vmul.f32 %v678_v10, %v564_v43 }
 0x5db   :  { %2836 = vmatpush1.bf16.msra.mxu0 %v3357_v33  ;;  %757 = vmatprep.mubr.f32.mxu0 %v3265_v3 }
 0x5dc   :  { %2838 = vmatprep.subr.bf16.mxu0 %v3360_v34 }
 0x5df   :  { %2840 = vmatpush1.bf16.msra.mxu0 %v3380_v40 }
 0x5e0   :  { %2842 = vmatprep.subr.bf16.mxu0 %v3383_v41 }
 0x5e3   :  { %2844 = vmatpush1.bf16.msra.mxu0 %v3403_v47 }
 0x5e4   :  { %2846 = vmatprep.subr.bf16.mxu0 %v3406_v48 }
 0x5e7   :  { %2848 = vmatpush1.bf16.msra.mxu0 %v3420_v52 }
 0x5e8   :  { %2850 = vmatprep.subr.bf16.mxu0 %v3340_v27 }
 0x63f   :  { %v661_v60 = vpop.permute.xlu1 %660 }
 0x6ad   :  { %v643_v44 = vpop.f32.mrb[6].mxu0 }
 0x6ae   :  { %v3015_v45 = vadd.f32 %v643_v44, %v3465_v61  ;;  %v645_v46 = vpop.f32.mrb[7].mxu0  ;;  %v788_v44 = vld [vmem:[%s4102_s0 + $0x60] sm:$0xff] }
 0x6af   :  { %v3016_v50 = vadd.f32 %v645_v46, %v3471_v1 }
 0x6b0   :  { %v650_v49 = vmul.f32 0.5, %v3015_v45  ;;  %v794_v45 = vsub.f32 1.0, %v788_v44 }
 0x6b1   :  { %v655_v57 = vmul.f32 0.5, %v3016_v50 }
 0x6b2   :  { %3145 = vtanh.f32 %v650_v49 }
 0x6b3   :  { %3147 = vtanh.f32 %v3016_v50 }
 0x6b4   :  { %3149 = vtanh.f32 %v655_v57 }
 0x6bc   :  { %v3146_v51 = vpop.eup %3145 }
 0x6bd   :  { %v652_v53 = vadd.f32 1.0, %v3146_v51  ;;  %v3148_v55 = vpop.eup %3147 }
 0x6be   :  { %v3150_v4 = vpop.eup %3149 }
 0x6bf   :  { %v653_v54 = vmul.f32 0.5, %v652_v53  ;;  %v657_v5 = vadd.f32 1.0, %v3150_v4 }
 0x6c1   :  { %v664_v56 = vmul.f32 %v3148_v55, %v653_v54  ;;  %v663_v63 = vmul.f32 %v661_v60, %v653_v54  ;;  %v658_v6 = vmul.f32 0.5, %v657_v5 }
 0x6c3   :  { %666 = vrot.lane.b32.xlu0 %v664_v56, %s3266_s7 }
 0x735   :  { %v667_v0 = vpop.permute.xlu0 %666 }
 0x736   :  { %v669_v2 = vadd.f32 %v667_v0, %v663_v63 }
 0x738   :  { %3151 = vtanh.f32 %v669_v2  ;;  %682 = vrot.lane.b32.xlu0 %v669_v2, %s3266_s7 }
 0x742   :  { %v3152_v7 = vpop.eup %3151 }
 0x743   :  { %v671_v8 = vmul.f32 %v3152_v7, %v658_v6 }
 0x745   :  { %674 = vrot.lane.b32.xlu1 %v671_v8, %s3266_s7 }
 0x7aa   :  { %v683_v11 = vpop.permute.xlu0 %682 }
 0x7ab   :  { %v685_v13 = vmul.f32 %v683_v11, %v672_v9 }
 0x7ad   :  { %v687_v14 = vadd.f32 %v686_v12, %v685_v13 }
 0x7af   :  { %776 = vrot.lane.b32.xlu1 %v687_v14, %s3266_s7  ;;  %v802_v49 = vmul.f32 %v794_v45, %v687_v14 }
 0x7b7   :  { %v675_v15 = vpop.permute.xlu1 %674 }
 0x7b8   :  { %v677_v17 = vmul.f32 %v675_v15, %v672_v9 }
 0x7ba   :  { %v680_v18 = vadd.f32 %v679_v16, %v677_v17  ;;  %688 = vst.msk [vmem:[#allocation2 + $0x18] sm:$0xff] %vm338_vm1, %v677_v17 }
 0x7bb   :  { %689 = vst.msk [vmem:[#allocation2 + $0x20] sm:$0xff] %vm340_vm2, %v677_v17 }
 0x7bc   :  { %2437 = vmatmul.mubr.msk.f32.vlgmr.msra.gmra.mrb[8].mxu0 %vm91_vm0, %v680_v18  ;;  %v795_v54 = vmul.f32 %v794_v45, %v680_v18  ;;  %v904_v18 = vld [vmem:[%s4102_s0 + $0x68] sm:$0xff] }
 0x7bd   :  { %2852 = vmatpush1.bf16.msra.mxu0 %v3357_v33  ;;  %873 = vmatprep.mubr.f32.mxu0 %v3265_v3 }
 0x7be   :  { %2854 = vmatprep.subr.bf16.mxu0 %v3360_v34 }
 0x7c1   :  { %2856 = vmatpush1.bf16.msra.mxu0 %v3380_v40 }
 0x7c2   :  { %2858 = vmatprep.subr.bf16.mxu0 %v3383_v41 }
 0x7c5   :  { %2860 = vmatpush1.bf16.msra.mxu0 %v3403_v47 }
 0x7c6   :  { %2862 = vmatprep.subr.bf16.mxu0 %v3406_v48 }
 0x7c9   :  { %2864 = vmatpush1.bf16.msra.mxu0 %v3420_v52 }
 0x7ca   :  { %2866 = vmatprep.subr.bf16.mxu0 %v3340_v27 }
 0x821   :  { %v777_v31 = vpop.permute.xlu1 %776 }
 0x88f   :  { %v759_v19 = vpop.f32.mrb[8].mxu0 }
 0x890   :  { %v3017_v20 = vadd.f32 %v759_v19, %v3465_v61  ;;  %v761_v21 = vpop.f32.mrb[9].mxu0  ;;  %v910_v19 = vsub.f32 1.0, %v904_v18 }
 0x891   :  { %v3018_v23 = vadd.f32 %v761_v21, %v3471_v1 }
 0x892   :  { %v766_v22 = vmul.f32 0.5, %v3017_v20 }
 0x893   :  { %v771_v30 = vmul.f32 0.5, %v3018_v23 }
 0x894   :  { %3153 = vtanh.f32 %v766_v22 }
 0x895   :  { %3155 = vtanh.f32 %v3018_v23 }
 0x896   :  { %3157 = vtanh.f32 %v771_v30 }
 0x89e   :  { %v3154_v24 = vpop.eup %3153 }
 0x89f   :  { %v768_v25 = vadd.f32 1.0, %v3154_v24  ;;  %v3156_v28 = vpop.eup %3155 }
 0x8a0   :  { %v3158_v37 = vpop.eup %3157 }
 0x8a1   :  { %v769_v26 = vmul.f32 0.5, %v768_v25  ;;  %v773_v38 = vadd.f32 1.0, %v3158_v37 }
 0x8a3   :  { %v780_v29 = vmul.f32 %v3156_v28, %v769_v26  ;;  %v779_v32 = vmul.f32 %v777_v31, %v769_v26  ;;  %v774_v39 = vmul.f32 0.5, %v773_v38 }
 0x8a5   :  { %782 = vrot.lane.b32.xlu0 %v780_v29, %s3266_s7 }
 0x917   :  { %v783_v35 = vpop.permute.xlu0 %782 }
 0x918   :  { %v785_v36 = vadd.f32 %v783_v35, %v779_v32 }
 0x91a   :  { %3159 = vtanh.f32 %v785_v36  ;;  %798 = vrot.lane.b32.xlu0 %v785_v36, %s3266_s7 }
 0x924   :  { %v3160_v42 = vpop.eup %3159 }
 0x925   :  { %v787_v43 = vmul.f32 %v3160_v42, %v774_v39 }
 0x927   :  { %790 = vrot.lane.b32.xlu1 %v787_v43, %s3266_s7 }
 0x98c   :  { %v799_v46 = vpop.permute.xlu0 %798 }
 0x98d   :  { %v801_v50 = vmul.f32 %v799_v46, %v788_v44  ;;  %v1020_v46 = vld [vmem:[%s4102_s0 + $0x70] sm:$0xff] }
 0x98f   :  { %v803_v51 = vadd.f32 %v802_v49, %v801_v50  ;;  %v1026_v49 = vsub.f32 1.0, %v1020_v46 }
 0x991   :  { %892 = vrot.lane.b32.xlu1 %v803_v51, %s3266_s7  ;;  %v918_v21 = vmul.f32 %v910_v19, %v803_v51 }
 0x999   :  { %v791_v53 = vpop.permute.xlu1 %790 }
 0x99a   :  { %v793_v55 = vmul.f32 %v791_v53, %v788_v44 }
 0x99c   :  { %v796_v56 = vadd.f32 %v795_v54, %v793_v55  ;;  %804 = vst.msk [vmem:[#allocation2 + $0x20] sm:$0xff] %vm338_vm1, %v793_v55 }
 0x99d   :  { %805 = vst.msk [vmem:[#allocation2 + $0x18] sm:$0xff] %vm340_vm2, %v793_v55 }
 0x99e   :  { %2438 = vmatmul.mubr.msk.f32.vlgmr.msra.gmra.mrb[10].mxu0 %vm91_vm0, %v796_v56  ;;  %v911_v25 = vmul.f32 %v910_v19, %v796_v56 }
 0x99f   :  { %2868 = vmatpush1.bf16.msra.mxu0 %v3357_v33  ;;  %989 = vmatprep.mubr.f32.mxu0 %v3265_v3 }
 0x9a0   :  { %2870 = vmatprep.subr.bf16.mxu0 %v3360_v34 }
 0x9a3   :  { %2872 = vmatpush1.bf16.msra.mxu0 %v3380_v40 }
 0x9a4   :  { %2874 = vmatprep.subr.bf16.mxu0 %v3383_v41 }
 0x9a7   :  { %2876 = vmatpush1.bf16.msra.mxu0 %v3403_v47 }
 0x9a8   :  { %2878 = vmatprep.subr.bf16.mxu0 %v3406_v48 }
 0x9ab   :  { %2880 = vmatpush1.bf16.msra.mxu0 %v3420_v52 }
 0x9ac   :  { %2882 = vmatprep.subr.bf16.mxu0 %v3340_v27 }
 0xa03   :  { %v893_v10 = vpop.permute.xlu1 %892 }
 0xa71   :  { %v875_v57 = vpop.f32.mrb[10].mxu0 }
 0xa72   :  { %v3019_v60 = vadd.f32 %v875_v57, %v3465_v61  ;;  %v877_v63 = vpop.f32.mrb[11].mxu0 }
 0xa73   :  { %v3020_v2 = vadd.f32 %v877_v63, %v3471_v1 }
 0xa74   :  { %v882_v0 = vmul.f32 0.5, %v3019_v60 }
 0xa75   :  { %v887_v9 = vmul.f32 0.5, %v3020_v2 }
 0xa76   :  { %3161 = vtanh.f32 %v882_v0 }
 0xa77   :  { %3163 = vtanh.f32 %v3020_v2 }
 0xa78   :  { %3165 = vtanh.f32 %v887_v9 }
 0xa80   :  { %v3162_v4 = vpop.eup %3161 }
 0xa81   :  { %v884_v5 = vadd.f32 1.0, %v3162_v4  ;;  %v3164_v7 = vpop.eup %3163 }
 0xa82   :  { %v3166_v13 = vpop.eup %3165 }
 0xa83   :  { %v885_v6 = vmul.f32 0.5, %v884_v5  ;;  %v889_v14 = vadd.f32 1.0, %v3166_v13  ;;  %v64_v13 = vld [vmem:[%s4101_s1 + $0x128] sm:$0xff] }
 0xa85   :  { %v896_v8 = vmul.f32 %v3164_v7, %v885_v6  ;;  %v895_v27 = vmul.f32 %v893_v10, %v885_v6  ;;  %v890_v15 = vmul.f32 0.5, %v889_v14  ;;  %v66_v14 = vld [vmem:[%s4101_s1 + $0x138] sm:$0xff] }
 0xa87   :  { %898 = vrot.lane.b32.xlu0 %v896_v8, %s3266_s7 }
 0xaf9   :  { %v899_v11 = vpop.permute.xlu0 %898 }
 0xafa   :  { %v901_v12 = vadd.f32 %v899_v11, %v895_v27  ;;  %v60_v27 = vld [vmem:[%s4101_s1 + $0x108] sm:$0xff] }
 0xafc   :  { %3167 = vtanh.f32 %v901_v12  ;;  %914 = vrot.lane.b32.xlu0 %v901_v12, %s3266_s7  ;;  %v61_v12 = vld [vmem:[%s4101_s1 + $0x110] sm:$0xff] }
 0xb06   :  { %v3168_v16 = vpop.eup %3167 }
 0xb07   :  { %v903_v17 = vmul.f32 %v3168_v16, %v890_v15  ;;  %v2901_v16 = vpack.c.bf16 %v66_v14, %v64_v13 }
 0xb09   :  { %906 = vrot.lane.b32.xlu1 %v903_v17, %s3266_s7  ;;  %v63_v17 = vld [vmem:[%s4101_s1 + $0x120] sm:$0xff] }
 0xb6e   :  { %v915_v20 = vpop.permute.xlu0 %914 }
 0xb6f   :  { %v917_v22 = vmul.f32 %v915_v20, %v904_v18 }
 0xb71   :  { %v919_v23 = vadd.f32 %v918_v21, %v917_v22 }
 0xb73   :  { %1008 = vrot.lane.b32.xlu1 %v919_v23, %s3266_s7  ;;  %v1034_v51 = vmul.f32 %v1026_v49, %v919_v23 }
 0xb7b   :  { %v907_v24 = vpop.permute.xlu1 %906 }
 0xb7c   :  { %v909_v26 = vmul.f32 %v907_v24, %v904_v18  ;;  %v65_v18 = vld [vmem:[%s4101_s1 + $0x130] sm:$0xff] }
 0xb7d   :  { %v2903_v19 = vpack.c.bf16 %v65_v18, %v63_v17 }
 0xb7e   :  { %v912_v28 = vadd.f32 %v911_v25, %v909_v26  ;;  %920 = vst.msk [vmem:[#allocation2 + $0x28] sm:$0xff] %vm338_vm1, %v909_v26  ;;  %v68_v25 = vld [vmem:[%s4101_s1 + $0x148] sm:$0xff] }
 0xb7f   :  { %921 = vst.msk [vmem:[#allocation2 + $0x10] sm:$0xff] %vm340_vm2, %v909_v26  ;;  %v70_v26 = vld [vmem:[%s4101_s1 + $0x158] sm:$0xff] }
 0xb80   :  { %2439 = vmatmul.mubr.msk.f32.vlgmr.msra.gmra.mrb[12].mxu0 %vm91_vm0, %v912_v28  ;;  %v1027_v56 = vmul.f32 %v1026_v49, %v912_v28  ;;  %v2905_v28 = vpack.c.bf16 %v70_v26, %v68_v25  ;;  %v1148_v49 = vld [vmem:[#allocation2 + $0x20] sm:$0xff] }
 0xb81   :  { %2884 = vmatpush1.bf16.msra.mxu0 %v3357_v33  ;;  %1105 = vmatprep.mubr.f32.mxu0 %v3265_v3 }
 0xb82   :  { %2886 = vmatprep.subr.bf16.mxu0 %v3360_v34 }
 0xb85   :  { %2888 = vmatpush1.bf16.msra.mxu0 %v3380_v40 }
 0xb86   :  { %2890 = vmatprep.subr.bf16.mxu0 %v3383_v41 }
 0xb89   :  { %2892 = vmatpush1.bf16.msra.mxu0 %v3403_v47 }
 0xb8a   :  { %2894 = vmatprep.subr.bf16.mxu0 %v3406_v48 }
 0xb8d   :  { %2896 = vmatpush1.bf16.msra.mxu0 %v3420_v52 }
 0xbe5   :  { %v1009_v48 = vpop.permute.xlu1 %1008 }
 0xc53   :  { %v991_v29 = vpop.f32.mrb[12].mxu0 }
 0xc54   :  { %v3021_v30 = vadd.f32 %v991_v29, %v3465_v61  ;;  %v993_v31 = vpop.f32.mrb[13].mxu0  ;;  %v67_v29 = vld [vmem:[%s4101_s1 + $0x140] sm:$0xff] }
 0xc55   :  { %v3022_v33 = vadd.f32 %v993_v31, %v3471_v1 }
 0xc56   :  { %v998_v32 = vmul.f32 0.5, %v3021_v30  ;;  %v69_v30 = vld [vmem:[%s4101_s1 + $0x150] sm:$0xff] }
 0xc57   :  { %v1003_v47 = vmul.f32 0.5, %v3022_v33  ;;  %v2907_v31 = vpack.c.bf16 %v69_v30, %v67_v29 }
 0xc58   :  { %3169 = vtanh.f32 %v998_v32 }
 0xc59   :  { %3171 = vtanh.f32 %v3022_v33  ;;  %v72_v33 = vld [vmem:[%s4101_s1 + $0x168] sm:$0xff] }
 0xc5a   :  { %3173 = vtanh.f32 %v1003_v47 }
 0xc62   :  { %v3170_v34 = vpop.eup %3169 }
 0xc63   :  { %v1000_v35 = vadd.f32 1.0, %v3170_v34  ;;  %v3172_v36 = vpop.eup %3171  ;;  %v74_v34 = vld [vmem:[%s4101_s1 + $0x178] sm:$0xff] }
 0xc64   :  { %v3174_v39 = vpop.eup %3173 }
 0xc65   :  { %v1001_v40 = vmul.f32 0.5, %v1000_v35  ;;  %v1005_v42 = vadd.f32 1.0, %v3174_v39  ;;  %v71_v35 = vld [vmem:[%s4101_s1 + $0x160] sm:$0xff] }
 0xc67   :  { %v1012_v41 = vmul.f32 %v3172_v36, %v1001_v40  ;;  %v1011_v52 = vmul.f32 %v1009_v48, %v1001_v40  ;;  %v1006_v43 = vmul.f32 0.5, %v1005_v42  ;;  %v2909_v40 = vpack.c.bf16 %v74_v34, %v72_v33  ;;  %v73_v36 = vld [vmem:[%s4101_s1 + $0x170] sm:$0xff] }
 0xc69   :  { %1014 = vrot.lane.b32.xlu0 %v1012_v41, %s3266_s7  ;;  %v2911_v41 = vpack.c.bf16 %v73_v36, %v71_v35 }
 0xcdb   :  { %v1015_v37 = vpop.permute.xlu0 %1014 }
 0xcdc   :  { %v1017_v38 = vadd.f32 %v1015_v37, %v1011_v52 }
 0xcde   :  { %3175 = vtanh.f32 %v1017_v38  ;;  %1030 = vrot.lane.b32.xlu0 %v1017_v38, %s3266_s7  ;;  %v1136_v38 = vld [vmem:[%s4102_s0 + $0x78] sm:$0xff] }
 0xce8   :  { %v3176_v44 = vpop.eup %3175 }
 0xce9   :  { %v1019_v45 = vmul.f32 %v3176_v44, %v1006_v43 }
 0xceb   :  { %1022 = vrot.lane.b32.xlu1 %v1019_v45, %s3266_s7  ;;  %v1146_v45 = vld [vmem:[#allocation2 + $0x10] sm:$0xff] }
 0xd50   :  { %v1031_v50 = vpop.permute.xlu0 %1030 }
 0xd51   :  { %v1033_v53 = vmul.f32 %v1031_v50, %v1020_v46  ;;  %v1149_v50 = vld [vmem:[#allocation2 + $0x28] sm:$0xff] }
 0xd53   :  { %v1035_v54 = vadd.f32 %v1034_v51, %v1033_v53 }
 0xd55   :  { %1124 = vrot.lane.b32.xlu1 %v1035_v54, %s3266_s7  ;;  %v2425_v54 = vld [vmem:[%s4101_s1 + $0x201] ss:$8 sm:$0x3] }
 0xd5d   :  { %v1023_v55 = vpop.permute.xlu1 %1022 }
 0xd5e   :  { %v1025_v57 = vmul.f32 %v1023_v55, %v1020_v46  ;;  %v1147_v46 = vld [vmem:[#allocation2 + $0x18] sm:$0xff]  ;;  %v1156_v55 = vrot.slane %v2425_v54, %v83_v59 }
 0xd60   :  { %v1028_v60 = vadd.f32 %v1027_v56, %v1025_v57  ;;  %1036 = vst.msk [vmem:[#allocation2 + $0x30] sm:$0xff] %vm338_vm1, %v1025_v57 }
 0xd61   :  { %1037 = vst.msk [vmem:[#allocation2 + $0x8] sm:$0xff] %vm340_vm2, %v1025_v57 }
 0xd62   :  { %2440 = vmatmul.mubr.msk.f32.vlgmr.msra.gmra.mrb[14].mxu0 %vm91_vm0, %v1028_v60 }
 0xd67   :  { %v1150_v51 = vld [vmem:[#allocation2 + $0x30] sm:$0xff] }
 0xd68   :  { %v1145_v44 = vld [vmem:[#allocation2 + $0x8] sm:$0xff] }
 0xdc7   :  { %v1125_v21 = vpop.permute.xlu1 %1124 }
 0xe35   :  { %v1107_v63 = vpop.f32.mrb[14].mxu0 }
 0xe36   :  { %v3023_v0 = vadd.f32 %v1107_v63, %v3465_v61  ;;  %v1109_v2 = vpop.f32.mrb[15].mxu0  ;;  %v62_v61 = vld [vmem:[%s4101_s1 + $0x118] sm:$0xff]  ;;  %v1160_v63 = vrot.slane %v2425_v54, %v87_v62  ;;  %v3805_v54 = vld [vmem:[%s4102_s0 + $0x88] sm:$0xff] }
 0xe37   :  { %v3024_v5 = vadd.f32 %v1109_v2, %v3471_v1  ;;  %v59_v1 = vld [vmem:[%s4101_s1 + $0x100] sm:$0xff]  ;;  %v2897_v11 = vpack.c.bf16 %v62_v61, %v60_v27 }
 0xe38   :  { %v1114_v4 = vmul.f32 0.5, %v3023_v0  ;;  %v2899_v15 = vpack.c.bf16 %v61_v12, %v59_v1 }
 0xe39   :  { %2898 = vmatprep.subr.bf16.mxu1 %v2897_v11  ;;  %v1119_v20 = vmul.f32 0.5, %v3024_v5 }
 0xe3a   :  { %3177 = vtanh.f32 %v1114_v4  ;;  %2900 = vmatpush1.bf16.msra.mxu1 %v2899_v15 }
 0xe3b   :  { %3179 = vtanh.f32 %v3024_v5  ;;  %2902 = vmatprep.subr.bf16.mxu1 %v2901_v16 }
 0xe3c   :  { %3181 = vtanh.f32 %v1119_v20 }
 0xe3e   :  { %2904 = vmatpush1.bf16.msra.mxu1 %v2903_v19 }
 0xe3f   :  { %2906 = vmatprep.subr.bf16.mxu1 %v2905_v28 }
 0xe42   :  { %2908 = vmatpush1.bf16.msra.mxu1 %v2907_v31 }
 0xe43   :  { %2910 = vmatprep.subr.bf16.mxu1 %v2909_v40 }
 0xe44   :  { %v3178_v6 = vpop.eup %3177 }
 0xe45   :  { %v1116_v7 = vadd.f32 1.0, %v3178_v6  ;;  %v3180_v9 = vpop.eup %3179 }
 0xe46   :  { %v3182_v32 = vpop.eup %3181  ;;  %2912 = vmatpush1.bf16.msra.mxu1 %v2911_v41 }
 0xe47   :  { %v1117_v8 = vmul.f32 0.5, %v1116_v7  ;;  %v1121_v47 = vadd.f32 1.0, %v3182_v32 }
 0xe49   :  { %v1128_v10 = vmul.f32 %v3180_v9, %v1117_v8  ;;  %v1127_v22 = vmul.f32 %v1125_v21, %v1117_v8  ;;  %v1122_v48 = vmul.f32 0.5, %v1121_v47 }
 0xe4b   :  { %1130 = vrot.lane.b32.xlu0 %v1128_v10, %s3266_s7 }
 0xebd   :  { %v1131_v23 = vpop.permute.xlu0 %1130 }
 0xebe   :  { %v1133_v24 = vadd.f32 %v1131_v23, %v1127_v22 }
 0xec0   :  { %3183 = vtanh.f32 %v1133_v24 }
 0xeca   :  { %v3184_v52 = vpop.eup %3183 }
 0xecb   :  { %v1135_v37 = vmul.f32 %v3184_v52, %v1122_v48 }
 0xecd   :  { %1138 = vrot.lane.b32.xlu1 %v1135_v37, %s3266_s7 }
 0xf3f   :  { %v1139_v39 = vpop.permute.xlu1 %1138 }
 0xf40   :  { %v1141_v42 = vmul.f32 %v1139_v39, %v1136_v38 }
 0xf42   :  { %1142 = vst.msk [vmem:[#allocation2 + $0x38] sm:$0xff] %vm338_vm1, %v1141_v42 }
 0xf43   :  { %1143 = vst.msk [vmem:[#allocation2] sm:$0xff] %vm340_vm2, %v1141_v42 }
 0xf49   :  { %v1151_v53 = vld [vmem:[#allocation2 + $0x38] sm:$0xff] }
 0xf4a   :  { %v1144_v43 = vld [vmem:[#allocation2] sm:$0xff] }
 0xf4b   :  { %2441 = vmatmul.mubr.msk.f32.vlgmr.msra.gmra.mrb[0].mxu1 %vm91_vm0, %v1144_v43 }
 0xf4c   :  { %1257 = vmatprep.mubr.f32.mxu1 %v3265_v3 }
 0xf4f   :  { %2442 = vmatmul.mubr.msk.f32.gmra.mrb[2].mxu1 %vm91_vm0, %v1145_v44 }
 0xf50   :  { %1263 = vmatprep.mubr.f32.mxu1 %v3265_v3 }
 0xf53   :  { %2443 = vmatmul.mubr.msk.f32.gmra.mrb[4].mxu1 %vm91_vm0, %v1146_v45 }
 0xf54   :  { %1269 = vmatprep.mubr.f32.mxu1 %v3265_v3 }
 0xf57   :  { %2444 = vmatmul.mubr.msk.f32.gmra.mrb[6].mxu1 %vm91_vm0, %v1147_v46 }
 0xf58   :  { %1275 = vmatprep.mubr.f32.mxu1 %v3265_v3 }
 0xf5b   :  { %2445 = vmatmul.mubr.msk.f32.gmra.mrb[8].mxu1 %vm91_vm0, %v1148_v49 }
 0xf5c   :  { %1281 = vmatprep.mubr.f32.mxu1 %v3265_v3 }
 0xf5f   :  { %2446 = vmatmul.mubr.msk.f32.gmra.mrb[10].mxu1 %vm91_vm0, %v1149_v50 }
 0xf60   :  { %1287 = vmatprep.mubr.f32.mxu1 %v3265_v3 }
 0xf63   :  { %2447 = vmatmul.mubr.msk.f32.gmra.mrb[12].mxu1 %vm91_vm0, %v1150_v51 }
 0xf64   :  { %1293 = vmatprep.mubr.f32.mxu1 %v3265_v3 }
 0xf67   :  { %2448 = vmatmul.mubr.msk.f32.gmra.mrb[14].mxu1 %vm91_vm0, %v1151_v53 }
0x101e   :  { %v1253_v56 = vpop.f32.mrb[0].mxu1 }
0x101f   :  { %v3686_v57 = vadd.f32 %v1253_v56, %v1156_v55  ;;  %v1255_v60 = vpop.f32.mrb[1].mxu1 }
0x1020   :  { %v3694_v4 = vadd.f32 %v1255_v60, %v1160_v63 }
0x1021   :  { %2617 = vmatprep.mubr.msk.f32.mxu1 %vm338_vm1, %v3686_v57 }
0x1022   :  { %v1259_v3 = vpop.f32.mrb[2].mxu1 }
0x1023   :  { %v3692_v0 = vadd.f32 %v1259_v3, %v1156_v55  ;;  %v1261_v2 = vpop.f32.mrb[3].mxu1 }
0x1024   :  { %v3696_v5 = vadd.f32 %v1261_v2, %v1160_v63 }
0x1025   :  { %v3700_v59 = vpack.i.bf16 %v3692_v0, %v3686_v57 }
0x1026   :  { %v3101_v6 = vpack.i.bf16 %v3696_v5, %v3694_v4  ;;  %v3706_v58 = vpack.c.bf16 %v3696_v5, %v3694_v4  ;;  %v1265_v62 = vpop.f32.mrb[4].mxu1 }
0x1027   :  { %v1267_v7 = vpop.f32.mrb[5].mxu1  ;;  %3062 = vrot.lane.b32.xlu0 %v3700_v59, %s3266_s7  ;;  %v3710_v9 = vadd.f32 %v1265_v62, %v1156_v55 }
0x1028   :  { %v3714_v61 = vadd.f32 %v1267_v7, %v1160_v63 }
0x102a   :  { %v1271_v8 = vpop.f32.mrb[6].mxu1 }
0x102b   :  { %v3712_v10 = vadd.f32 %v1271_v8, %v1156_v55  ;;  %v1273_v27 = vpop.f32.mrb[7].mxu1  ;;  %v3824_v8 = vld [vmem:[%s4102_s0 + $0x98] sm:$0xff] }
0x102c   :  { %v3716_v1 = vadd.f32 %v1273_v27, %v1160_v63 }
0x102d   :  { %v3720_v11 = vpack.i.bf16 %v3712_v10, %v3710_v9 }
0x102e   :  { %v3106_v12 = vpack.i.bf16 %v3716_v1, %v3714_v61  ;;  %v2941_v13 = vpack.c.bf16 %v3716_v1, %v3714_v61  ;;  %v1277_v14 = vpop.f32.mrb[8].mxu1 }
0x102f   :  { %v1279_v15 = vpop.f32.mrb[9].mxu1  ;;  %3067 = vrot.lane.b32.xlu1 %v3720_v11, %s3266_s7  ;;  %v3728_v17 = vadd.f32 %v1277_v14, %v1156_v55  ;;  %v3830_v14 = vld [vmem:[%s4102_s0 + $0xa0] sm:$0xff] }
0x1030   :  { %v3732_v20 = vadd.f32 %v1279_v15, %v1160_v63 }
0x1032   :  { %v1283_v16 = vpop.f32.mrb[10].mxu1 }
0x1033   :  { %v3730_v18 = vadd.f32 %v1283_v16, %v1156_v55  ;;  %v1285_v19 = vpop.f32.mrb[11].mxu1 }
0x1034   :  { %v3734_v21 = vadd.f32 %v1285_v19, %v1160_v63 }
0x1035   :  { %v3738_v22 = vpack.i.bf16 %v3730_v18, %v3728_v17 }
0x1036   :  { %v3111_v23 = vpack.i.bf16 %v3734_v21, %v3732_v20  ;;  %v2945_v24 = vpack.c.bf16 %v3734_v21, %v3732_v20  ;;  %v1289_v25 = vpop.f32.mrb[12].mxu1 }
0x1037   :  { %v1291_v26 = vpop.f32.mrb[13].mxu1  ;;  %3072 = vrot.lane.b32.xlu0 %v3738_v22, %s3266_s7  ;;  %v3746_v29 = vadd.f32 %v1289_v25, %v1156_v55 }
0x1038   :  { %v3750_v32 = vadd.f32 %v1291_v26, %v1160_v63 }
0x103a   :  { %v1295_v28 = vpop.f32.mrb[14].mxu1 }
0x103b   :  { %v3748_v30 = vadd.f32 %v1295_v28, %v1156_v55  ;;  %v1297_v31 = vpop.f32.mrb[15].mxu1  ;;  %v3810_v55 = vld [vmem:[%s4102_s0 + $0x80] sm:$0xff]  ;;  %v3843_v28 = vld [vmem:[%s4102_s0 + $0xb0] sm:$0xff] }
0x103c   :  { %v3752_v33 = vadd.f32 %v1297_v31, %v1160_v63 }
0x103d   :  { %v3756_v34 = vpack.i.bf16 %v3748_v30, %v3746_v29 }
0x103e   :  { %v3116_v35 = vpack.i.bf16 %v3752_v33, %v3750_v32  ;;  %v2949_v40 = vpack.c.bf16 %v3752_v33, %v3750_v32 }
0x103f   :  { %3077 = vrot.lane.b32.xlu1 %v3756_v34, %s3266_s7 }
0x1099   :  { %v3063_v36 = vpop.permute.xlu0 %3062 }
0x109a   :  { %v3065_v41 = vunpack.i.h.bf16 %v3063_v36  ;;  %v3064_v47 = vunpack.i.l.bf16 %v3063_v36 }
0x109c   :  { %v2913_v52 = vpack.c.bf16 %v3065_v41, %v3064_v47  ;;  %v3851_v47 = vld [vmem:[%s4102_s0 + $0xb8] sm:$0xff] }
0x109e   :  { %2915 = vmatprep.subr.msk.bf16.mxu1 %vm3766_vm3, %v2913_v52 }
0x109f   :  { %2918 = vmatpush3.bf16.xpose.msk.msra.mxu1 %vm3766_vm3, %v2913_v52 }
0x10a1   :  { %v3068_v37 = vpop.permute.xlu1 %3067 }
0x10a2   :  { %v3070_v38 = vunpack.i.h.bf16 %v3068_v37  ;;  %v3069_v39 = vunpack.i.l.bf16 %v3068_v37 }
0x10a4   :  { %v2919_v42 = vpack.c.bf16 %v3070_v38, %v3069_v39 }
0x10a6   :  { %2921 = vmatprep.subr.msk.bf16.mxu1 %vm3766_vm3, %v2919_v42 }
0x10a7   :  { %2924 = vmatpush3.bf16.xpose.msk.msra.mxu1 %vm3766_vm3, %v2919_v42 }
0x10a9   :  { %v3073_v43 = vpop.permute.xlu0 %3072 }
0x10aa   :  { %v3075_v44 = vunpack.i.h.bf16 %v3073_v43  ;;  %v3074_v45 = vunpack.i.l.bf16 %v3073_v43 }
0x10ac   :  { %v2925_v46 = vpack.c.bf16 %v3075_v44, %v3074_v45 }
0x10ae   :  { %2927 = vmatprep.subr.msk.bf16.mxu1 %vm3766_vm3, %v2925_v46 }
0x10af   :  { %2930 = vmatpush3.bf16.xpose.msk.msra.mxu1 %vm3766_vm3, %v2925_v46 }
0x10b1   :  { %v3078_v49 = vpop.permute.xlu1 %3077 }
0x10b2   :  { %v3080_v50 = vunpack.i.h.bf16 %v3078_v49  ;;  %v3079_v51 = vunpack.i.l.bf16 %v3078_v49 }
0x10b4   :  { %v2931_v53 = vpack.c.bf16 %v3080_v50, %v3079_v51 }
0x10b6   :  { %2933 = vmatprep.subr.msk.bf16.mxu1 %vm3766_vm3, %v2931_v53 }
0x10b7   :  { %2936 = vmatpush3.bf16.xpose.msk.msra.mxu1 %vm3766_vm3, %v2931_v53 }
0x10b8   :  { %2938 = vmatprep.subr.bf16.mxu1 %v3706_v58 }
0x10be   :  { %2618 = vmatmul.mubr.msk.f32.vlgmr.msra.gmra.mrb[16].mxu1 %vm338_vm1, %v3692_v0 }
0x10bf   :  { %2620 = vmatprep.mubr.msk.f32.mxu1 %vm338_vm1, %v3710_v9  ;;  %2940 = vmatpush3.bf16.msra.mxu1 %v3706_v58  ;;  %v3818_v58 = vld [vmem:[%s4102_s0 + $0x90] sm:$0xff] }
0x10c0   :  { %2942 = vmatprep.subr.bf16.mxu1 %v2941_v13 }
0x10c2   :  { %2621 = vmatmul.mubr.msk.f32.gmra.mrb[18].mxu1 %vm338_vm1, %v3712_v10 }
0x10c3   :  { %2623 = vmatprep.mubr.msk.f32.mxu1 %vm338_vm1, %v3728_v17  ;;  %2944 = vmatpush3.bf16.msra.mxu1 %v2941_v13 }
0x10c4   :  { %2946 = vmatprep.subr.bf16.mxu1 %v2945_v24 }
0x10c6   :  { %2624 = vmatmul.mubr.msk.f32.gmra.mrb[20].mxu1 %vm338_vm1, %v3730_v18 }
0x10c7   :  { %2626 = vmatprep.mubr.msk.f32.mxu1 %vm338_vm1, %v3746_v29  ;;  %2948 = vmatpush3.bf16.msra.mxu1 %v2945_v24  ;;  %v3837_v24 = vld [vmem:[%s4102_s0 + $0xa8] sm:$0xff] }
0x10c8   :  { %2950 = vmatprep.subr.bf16.mxu1 %v2949_v40 }
0x10ca   :  { %2627 = vmatmul.mubr.msk.f32.gmra.mrb[22].mxu1 %vm338_vm1, %v3748_v30 }
0x10cb   :  { %2952 = vmatpush3.bf16.msra.mxu1 %v2949_v40 }
0x1191   :  { %v2619_v56 = vpop.f32.mrb[16].mxu1 }
0x1192   :  { %v1429_v60 = vadd.f32 %v2619_v56, %v3805_v54  ;;  %v1423_v63 = vpop.f32.mrb[17].mxu1 }
0x1193   :  { %v1424_v3 = vadd.f32 %v1423_v63, %v3810_v55 }
0x1194   :  { %v1465_v2 = vsel %vm91_vm0, %v1429_v60, -inf }
0x1195   :  { %1466 = vmax.xlane.f32.xlu1 %v1465_v2  ;;  %v2622_v62 = vpop.f32.mrb[18].mxu1  ;;  %v1462_v7 = vsel %vm91_vm0, %v1424_v3, -inf }
0x1196   :  { %v1433_v27 = vpop.f32.mrb[19].mxu1  ;;  %1463 = vmax.xlane.f32.xlu0 %v1462_v7  ;;  %v1439_v15 = vadd.f32 %v2622_v62, %v3824_v8 }
0x1197   :  { %v1434_v13 = vadd.f32 %v1433_v27, %v3818_v58 }
0x1198   :  { %v1471_v41 = vsel %vm91_vm0, %v1439_v15, -inf }
0x1199   :  { %v2625_v16 = vpop.f32.mrb[20].mxu1  ;;  %v1468_v19 = vsel %vm91_vm0, %v1434_v13, -inf }
0x119a   :  { %v1443_v25 = vpop.f32.mrb[21].mxu1  ;;  %1469 = vmax.xlane.f32.xlu0 %v1468_v19  ;;  %v1449_v31 = vadd.f32 %v2625_v16, %v3837_v24 }
0x119b   :  { %v1444_v26 = vadd.f32 %v1443_v25, %v3830_v14 }
0x119c   :  { %v1477_v42 = vsel %vm91_vm0, %v1449_v31, -inf }
0x119d   :  { %v2628_v40 = vpop.f32.mrb[22].mxu1  ;;  %v1474_v36 = vsel %vm91_vm0, %v1444_v26, -inf }
0x119e   :  { %v1453_v52 = vpop.f32.mrb[23].mxu1  ;;  %1475 = vmax.xlane.f32.xlu1 %v1474_v36  ;;  %1472 = vmax.xlane.f32.xlu0 %v1471_v41  ;;  %v1459_v38 = vadd.f32 %v2628_v40, %v3851_v47 }
0x119f   :  { %v1454_v37 = vadd.f32 %v1453_v52, %v3843_v28 }
0x11a0   :  { %v1483_v43 = vsel %vm91_vm0, %v1459_v38, -inf }
0x11a1   :  { %v1480_v39 = vsel %vm91_vm0, %v1454_v37, -inf }
0x11a2   :  { %1481 = vmax.xlane.f32.xlu1 %v1480_v39  ;;  %1478 = vmax.xlane.f32.xlu0 %v1477_v42 }
0x11a6   :  { %1484 = vmax.xlane.f32.xlu0 %v1483_v43 }
0x1222   :  { %v1467_v44 = vpop.xlane.xlu1 %1466 }
0x1223   :  { %v1487_v45 = vsub.f32 %v1429_v60, %v1467_v44  ;;  %v1464_v46 = vpop.xlane.xlu0 %1463 }
0x1224   :  { %v1486_v49 = vsub.f32 %v1424_v3, %v1464_v46 }
0x1225   :  { %v1496_v50 = vmul.f32 1.442695, %v1487_v45 }
0x1226   :  { %v1494_v51 = vmul.f32 1.442695, %v1486_v49 }
0x1227   :  { %3185 = vpow2.f32 %v1496_v50  ;;  %v1470_v53 = vpop.xlane.xlu0 %1469 }
0x1228   :  { %3187 = vpow2.f32 %v1494_v51  ;;  %v1488_v56 = vsub.f32 %v1434_v13, %v1470_v53 }
0x122a   :  { %v1498_v63 = vmul.f32 1.442695, %v1488_v56 }
0x122b   :  { %v1476_v2 = vpop.xlane.xlu1 %1475  ;;  %v1473_v62 = vpop.xlane.xlu0 %1472 }
0x122c   :  { %3189 = vpow2.f32 %v1498_v63  ;;  %v1490_v7 = vsub.f32 %v1444_v26, %v1476_v2  ;;  %v1489_v27 = vsub.f32 %v1439_v15, %v1473_v62  ;;  %v1679_v2 = vld [vmem:[%s4101_s1 + $0x180] sm:$0xff]  ;;  %v1680_v62 = vld [vmem:[%s4101_s1 + $0x190] sm:$0xff] }
0x122e   :  { %v1502_v16 = vmul.f32 1.442695, %v1490_v7  ;;  %v1500_v19 = vmul.f32 1.442695, %v1489_v27  ;;  %v2953_v7 = vpack.c.bf16 %v1680_v62, %v1679_v2 }
0x122f   :  { %v1482_v25 = vpop.xlane.xlu1 %1481  ;;  %v1479_v40 = vpop.xlane.xlu0 %1478 }
0x1230   :  { %3191 = vpow2.f32 %v1502_v16  ;;  %v1492_v60 = vsub.f32 %v1454_v37, %v1482_v25  ;;  %v1491_v36 = vsub.f32 %v1449_v31, %v1479_v40  ;;  %2954 = vmatprep.subr.bf16.mxu1 %v2953_v7 }
0x1231   :  { %v3858_v3 = vpop.eup %3185  ;;  %3193 = vpow2.f32 %v1500_v19 }
0x1232   :  { %v3860_v41 = vpop.eup %3187  ;;  %v1506_v52 = vmul.f32 1.442695, %v1492_v60  ;;  %v1504_v13 = vmul.f32 1.442695, %v1491_v36  ;;  %v1513_v39 = vsel %vm91_vm0, %v3858_v3, 0.0 }
0x1233   :  { %1514 = vadd.xlane.f32.xlu0 %v1513_v39  ;;  %v1485_v26 = vpop.xlane.xlu0 %1484  ;;  %v1510_v15 = vsel %vm91_vm0, %v3860_v41, 0.0 }
0x1234   :  { %3195 = vpow2.f32 %v1506_v52  ;;  %v1493_v42 = vsub.f32 %v1459_v38, %v1485_v26  ;;  %1511 = vadd.xlane.f32.xlu1 %v1510_v15 }
0x1235   :  { %3197 = vpow2.f32 %v1504_v13 }
0x1236   :  { %v3866_v31 = vpop.eup %3189  ;;  %v1508_v37 = vmul.f32 1.442695, %v1493_v42 }
0x1237   :  { %v1516_v43 = vsel %vm91_vm0, %v3866_v31, 0.0 }
0x1238   :  { %3199 = vpow2.f32 %v1508_v37  ;;  %1517 = vadd.xlane.f32.xlu1 %v1516_v43 }
0x123a   :  { %v3870_v44 = vpop.eup %3191 }
0x123b   :  { %v3872_v45 = vpop.eup %3193  ;;  %v1522_v46 = vsel %vm91_vm0, %v3870_v44, 0.0 }
0x123c   :  { %1523 = vadd.xlane.f32.xlu1 %v1522_v46  ;;  %v1519_v38 = vsel %vm91_vm0, %v3872_v45, 0.0 }
0x123d   :  { %1520 = vadd.xlane.f32.xlu0 %v1519_v38 }
0x123e   :  { %v3878_v49 = vpop.eup %3195 }
0x123f   :  { %v3880_v50 = vpop.eup %3197  ;;  %v1528_v51 = vsel %vm91_vm0, %v3878_v49, 0.0 }
0x1240   :  { %1529 = vadd.xlane.f32.xlu1 %v1528_v51  ;;  %v1525_v53 = vsel %vm91_vm0, %v3880_v50, 0.0 }
0x1241   :  { %1526 = vadd.xlane.f32.xlu0 %v1525_v53 }
0x1242   :  { %v3886_v56 = vpop.eup %3199 }
0x1243   :  { %v1531_v63 = vsel %vm91_vm0, %v3886_v56, 0.0 }
0x1245   :  { %1532 = vadd.xlane.f32.xlu0 %v1531_v63 }
0x1251   :  { %3082 = vrot.lane.b32.xlu1 %v3700_v59, %s3267_s22 }
0x1255   :  { %3092 = vrot.lane.b32.xlu1 %v3738_v22, %s3267_s22 }
0x1259   :  { %3097 = vrot.lane.b32.xlu1 %v3756_v34, %s3267_s22 }
0x125b   :  { %3087 = vrot.lane.b32.xlu0 %v3720_v11, %s3267_s22 }
0x125d   :  { %1822 = vrot.lane.b32.xlu1 %v3692_v0, %s3268_s23 }
0x125f   :  { %1820 = vrot.lane.b32.xlu0 %v3686_v57, %s3268_s23 }
0x1261   :  { %1826 = vrot.lane.b32.xlu1 %v3712_v10, %s3268_s23 }
0x1263   :  { %1824 = vrot.lane.b32.xlu0 %v3710_v9, %s3268_s23 }
0x1265   :  { %1830 = vrot.lane.b32.xlu1 %v3730_v18, %s3268_s23  ;;  %v1682_v18 = vld [vmem:[%s4101_s1 + $0x1b0] sm:$0xff] }
0x1267   :  { %1828 = vrot.lane.b32.xlu0 %v3728_v17, %s3268_s23  ;;  %v1681_v17 = vld [vmem:[%s4101_s1 + $0x1a0] sm:$0xff] }
0x1268   :  { %v2957_v16 = vpack.c.bf16 %v1682_v18, %v1681_v17 }
0x1269   :  { %1834 = vrot.lane.b32.xlu1 %v3748_v30, %s3268_s23 }
0x126b   :  { %1832 = vrot.lane.b32.xlu0 %v3746_v29, %s3268_s23 }
0x12c0   :  { %v1515_v0 = vpop.xlane.xlu0 %1514 }
0x12c1   :  { %3201 = vrcp.f32 %v1515_v0  ;;  %v1512_v57 = vpop.xlane.xlu1 %1511 }
0x12c2   :  { %3203 = vrcp.f32 %v1512_v57 }
0x12c5   :  { %v1518_v59 = vpop.xlane.xlu1 %1517 }
0x12c6   :  { %3205 = vrcp.f32 %v1518_v59 }
0x12c9   :  { %v1524_v10 = vpop.xlane.xlu1 %1523 }
0x12ca   :  { %3207 = vrcp.f32 %v1524_v10  ;;  %v1521_v9 = vpop.xlane.xlu0 %1520 }
0x12cb   :  { %v3202_v11 = vpop.eup %3201  ;;  %3209 = vrcp.f32 %v1521_v9 }
0x12cc   :  { %v3204_v22 = vpop.eup %3203  ;;  %v1543_v34 = vmul.f32 %v3202_v11, %v3858_v3 }
0x12cd   :  { %v1530_v29 = vpop.xlane.xlu1 %1529  ;;  %v1542_v30 = vmul.f32 %v3204_v22, %v3860_v41 }
0x12ce   :  { %3211 = vrcp.f32 %v1530_v29  ;;  %v1527_v27 = vpop.xlane.xlu0 %1526 }
0x12cf   :  { %3213 = vrcp.f32 %v1527_v27  ;;  %2645 = vmatprep.mubr.msk.f32.mxu1 %vm91_vm0, %v1542_v30 }
0x12d0   :  { %v3206_v19 = vpop.eup %3205  ;;  %2646 = vmatmul.mubr.msk.f32.vlgmr.msra.gmra.mrb[24].mxu1 %vm91_vm0, %v1543_v34 }
0x12d1   :  { %v3083_v25 = vpop.permute.xlu1 %3082  ;;  %2956 = vmatpush3.bf16.msra.mxu1 %v2953_v7  ;;  %v1544_v40 = vmul.f32 %v3206_v19, %v3866_v31 }
0x12d2   :  { %v3085_v60 = vunpack.i.h.bf16 %v3083_v25  ;;  %v3084_v36 = vunpack.i.l.bf16 %v3083_v25  ;;  %v1533_v52 = vpop.xlane.xlu0 %1532  ;;  %2958 = vmatprep.subr.bf16.mxu1 %v2957_v16 }
0x12d3   :  { %3215 = vrcp.f32 %v1533_v52  ;;  %2648 = vmatprep.mubr.msk.f32.mxu1 %vm91_vm0, %v1544_v40 }
0x12d4   :  { %v3208_v3 = vpop.eup %3207  ;;  %v2961_v41 = vpack.c.bf16 %v3085_v60, %v3084_v36 }
0x12d5   :  { %v3210_v13 = vpop.eup %3209  ;;  %2960 = vmatpush3.bf16.msra.mxu1 %v2957_v16  ;;  %v1546_v39 = vmul.f32 %v3208_v3, %v3870_v44 }
0x12d6   :  { %2963 = vmatprep.subr.msk.bf16.mxu1 %vm3766_vm3, %v2961_v41  ;;  %v1545_v26 = vmul.f32 %v3210_v13, %v3872_v45  ;;  %v3088_v45 = vpop.permute.xlu0 %3087 }
0x12d7   :  { %v3090_v46 = vunpack.i.h.bf16 %v3088_v45  ;;  %v3089_v38 = vunpack.i.l.bf16 %v3088_v45 }
0x12d8   :  { %v3212_v15 = vpop.eup %3211  ;;  %2649 = vmatmul.mubr.msk.f32.gmra.mrb[26].mxu1 %vm91_vm0, %v1545_v26 }
0x12d9   :  { %v3214_v42 = vpop.eup %3213  ;;  %2651 = vmatprep.mubr.msk.f32.mxu1 %vm91_vm0, %v1546_v39  ;;  %v1548_v31 = vmul.f32 %v3212_v15, %v3878_v49  ;;  %v2967_v63 = vpack.c.bf16 %v3090_v46, %v3089_v38  ;;  %v3093_v49 = vpop.permute.xlu1 %3092 }
0x12da   :  { %v1547_v37 = vmul.f32 %v3214_v42, %v3880_v50  ;;  %v3095_v50 = vunpack.i.h.bf16 %v3093_v49  ;;  %v1821_v22 = vpop.permute.xlu0 %1820 }
0x12dc   :  { %2652 = vmatmul.mubr.msk.f32.gmra.mrb[28].mxu1 %vm91_vm0, %v1547_v37 }
0x12dd   :  { %v3216_v43 = vpop.eup %3215  ;;  %2654 = vmatprep.mubr.msk.f32.mxu1 %vm91_vm0, %v1548_v31  ;;  %v3098_v0 = vpop.permute.xlu1 %3097 }
0x12de   :  { %v1549_v44 = vmul.f32 %v3216_v43, %v3886_v56  ;;  %v3094_v56 = vunpack.i.l.bf16 %v3093_v49  ;;  %v3100_v10 = vunpack.i.h.bf16 %v3098_v0  ;;  %v3099_v9 = vunpack.i.l.bf16 %v3098_v0  ;;  %v1825_v30 = vpop.permute.xlu0 %1824 }
0x12e0   :  { %2655 = vmatmul.mubr.msk.f32.gmra.mrb[30].mxu1 %vm91_vm0, %v1549_v44  ;;  %v2973_v7 = vpack.c.bf16 %v3095_v50, %v3094_v56  ;;  %v2979_v18 = vpack.c.bf16 %v3100_v10, %v3099_v9 }
0x12e1   :  { %v1823_v29 = vpop.permute.xlu1 %1822 }
0x12e2   :  { %v1829_v27 = vpop.permute.xlu0 %1828 }
0x12e5   :  { %v1827_v34 = vpop.permute.xlu1 %1826 }
0x12e6   :  { %v1833_v19 = vpop.permute.xlu0 %1832 }
0x12e9   :  { %v1831_v16 = vpop.permute.xlu1 %1830 }
0x12ed   :  { %v1835_v25 = vpop.permute.xlu1 %1834 }
0x13a3   :  { %v2647_v51 = vpop.f32.mrb[24].mxu1 }
0x13a4   :  { %v1640_v53 = vpop.f32.mrb[25].mxu1 }
0x13a5   :  { %2665 = vmatprep.mubr.msk.f32.mxu1 %vm338_vm1, %v1640_v53 }
0x13a6   :  { %2666 = vmatmul.mubr.msk.f32.vlgmr.msra.gmra.mrb[32].mxu1 %vm338_vm1, %v2647_v51 }
0x13a7   :  { %2966 = vmatpush3.bf16.xpose.msk.msra.mxu1 %vm3766_vm3, %v2961_v41 }
0x13a8   :  { %2969 = vmatprep.subr.msk.bf16.mxu1 %vm3766_vm3, %v2967_v63 }
0x13ab   :  { %v2650_v2 = vpop.f32.mrb[26].mxu1 }
0x13ac   :  { %v1650_v62 = vpop.f32.mrb[27].mxu1 }
0x13ad   :  { %2668 = vmatprep.mubr.msk.f32.mxu1 %vm338_vm1, %v1650_v62 }
0x13ae   :  { %2669 = vmatmul.mubr.msk.f32.gmra.mrb[34].mxu1 %vm338_vm1, %v2650_v2 }
0x13af   :  { %v2653_v57 = vpop.f32.mrb[28].mxu1  ;;  %2972 = vmatpush3.bf16.xpose.msk.msra.mxu1 %vm3766_vm3, %v2967_v63 }
0x13b0   :  { %v1660_v59 = vpop.f32.mrb[29].mxu1  ;;  %2975 = vmatprep.subr.msk.bf16.mxu1 %vm3766_vm3, %v2973_v7 }
0x13b1   :  { %2671 = vmatprep.mubr.msk.f32.mxu1 %vm338_vm1, %v1660_v59 }
0x13b2   :  { %2672 = vmatmul.mubr.msk.f32.gmra.mrb[36].mxu1 %vm338_vm1, %v2653_v57 }
0x13b3   :  { %v2656_v11 = vpop.f32.mrb[30].mxu1 }
0x13b4   :  { %v1670_v17 = vpop.f32.mrb[31].mxu1 }
0x13b5   :  { %2674 = vmatprep.mubr.msk.f32.mxu1 %vm338_vm1, %v1670_v17 }
0x13b6   :  { %2675 = vmatmul.mubr.msk.f32.gmra.mrb[38].mxu1 %vm338_vm1, %v2656_v11 }
0x13b7   :  { %2978 = vmatpush3.bf16.xpose.msk.msra.mxu1 %vm3766_vm3, %v2973_v7  ;;  %2693 = vmatprep.mubr.msk.f32.mxu1 %vm338_vm1, %v1821_v22 }
0x13b8   :  { %2981 = vmatprep.subr.msk.bf16.mxu1 %vm3766_vm3, %v2979_v18 }
0x13bf   :  { %2984 = vmatpush3.bf16.xpose.msk.msra.mxu1 %vm3766_vm3, %v2979_v18 }
0x13c6   :  { %2694 = vmatmul.mubr.msk.f32.vlgmr.msra.gmra.mrb[40].mxu1 %vm338_vm1, %v1823_v29 }
0x13c7   :  { %2696 = vmatprep.mubr.msk.f32.mxu1 %vm338_vm1, %v1825_v30 }
0x13ca   :  { %2697 = vmatmul.mubr.msk.f32.gmra.mrb[42].mxu1 %vm338_vm1, %v1827_v34 }
0x13cb   :  { %2699 = vmatprep.mubr.msk.f32.mxu1 %vm338_vm1, %v1829_v27 }
0x13ce   :  { %2700 = vmatmul.mubr.msk.f32.gmra.mrb[44].mxu1 %vm338_vm1, %v1831_v16 }
0x13cf   :  { %2702 = vmatprep.mubr.msk.f32.mxu1 %vm338_vm1, %v1833_v19 }
0x13d2   :  { %2703 = vmatmul.mubr.msk.f32.gmra.mrb[46].mxu1 %vm338_vm1, %v1835_v25 }
0x1499   :  { %v2695_v48 = vpop.f32.mrb[40].mxu1 }
0x149a   :  { %v1956_v40 = vadd.f32 %v2695_v48, %v3805_v54  ;;  %v1950_v60 = vpop.f32.mrb[41].mxu1 }
0x149b   :  { %v1951_v36 = vadd.f32 %v1950_v60, %v3810_v55 }
0x149c   :  { %v1992_v52 = vsel %vm91_vm0, %v1956_v40, -inf }
0x149d   :  { %1993 = vmax.xlane.f32.xlu1 %v1992_v52  ;;  %v2698_v3 = vpop.f32.mrb[42].mxu1  ;;  %v1989_v41 = vsel %vm91_vm0, %v1951_v36, -inf }
0x149e   :  { %v1960_v13 = vpop.f32.mrb[43].mxu1  ;;  %1990 = vmax.xlane.f32.xlu0 %v1989_v41  ;;  %v1966_v26 = vadd.f32 %v2698_v3, %v3824_v8 }
0x149f   :  { %v1961_v39 = vadd.f32 %v1960_v13, %v3818_v58 }
0x14a0   :  { %v1998_v44 = vsel %vm91_vm0, %v1966_v26, -inf }
0x14a1   :  { %v2701_v15 = vpop.f32.mrb[44].mxu1  ;;  %v1995_v42 = vsel %vm91_vm0, %v1961_v39, -inf }
0x14a2   :  { %v1970_v31 = vpop.f32.mrb[45].mxu1  ;;  %1996 = vmax.xlane.f32.xlu0 %v1995_v42  ;;  %v1976_v55 = vadd.f32 %v2701_v15, %v3837_v24 }
0x14a3   :  { %v1971_v54 = vadd.f32 %v1970_v31, %v3830_v14 }
0x14a4   :  { %v2004_v38 = vsel %vm91_vm0, %v1976_v55, -inf }
0x14a5   :  { %v2704_v37 = vpop.f32.mrb[46].mxu1  ;;  %v2001_v43 = vsel %vm91_vm0, %v1971_v54, -inf }
0x14a6   :  { %v1980_v45 = vpop.f32.mrb[47].mxu1  ;;  %2002 = vmax.xlane.f32.xlu1 %v2001_v43  ;;  %1999 = vmax.xlane.f32.xlu0 %v1998_v44  ;;  %v1986_v8 = vadd.f32 %v2704_v37, %v3851_v47 }
0x14a7   :  { %v1981_v58 = vadd.f32 %v1980_v45, %v3843_v28 }
0x14a8   :  { %v2010_v14 = vsel %vm91_vm0, %v1986_v8, -inf }
0x14a9   :  { %v2007_v46 = vsel %vm91_vm0, %v1981_v58, -inf }
0x14aa   :  { %2008 = vmax.xlane.f32.xlu1 %v2007_v46  ;;  %2005 = vmax.xlane.f32.xlu0 %v2004_v38 }
0x14ae   :  { %2011 = vmax.xlane.f32.xlu0 %v2010_v14 }
0x14bb   :  { %3102 = vrot.lane.b32.xlu1 %v3101_v6, %s3268_s23 }
0x152a   :  { %v1994_v24 = vpop.xlane.xlu1 %1993 }
0x152b   :  { %v2014_v51 = vsub.f32 %v1956_v40, %v1994_v24  ;;  %v1991_v53 = vpop.xlane.xlu0 %1990 }
0x152c   :  { %v2013_v28 = vsub.f32 %v1951_v36, %v1991_v53  ;;  %v2239_v53 = vld [vmem:[%s4101_s1 + $0x1d0] sm:$0xff] }
0x152d   :  { %v2023_v63 = vmul.f32 1.442695, %v2014_v51  ;;  %v2238_v51 = vld [vmem:[%s4101_s1 + $0x1c0] sm:$0xff] }
0x152e   :  { %v2021_v47 = vmul.f32 1.442695, %v2013_v28 }
0x152f   :  { %3217 = vpow2.f32 %v2023_v63  ;;  %v1997_v49 = vpop.xlane.xlu0 %1996  ;;  %v3001_v63 = vpack.c.bf16 %v2239_v53, %v2238_v51 }
0x1530   :  { %3219 = vpow2.f32 %v2021_v47  ;;  %v2015_v50 = vsub.f32 %v1961_v39, %v1997_v49  ;;  %v2240_v49 = vld [vmem:[%s4101_s1 + $0x1e0] sm:$0xff] }
0x1532   :  { %v2025_v56 = vmul.f32 1.442695, %v2015_v50  ;;  %v2241_v50 = vld [vmem:[%s4101_s1 + $0x1f0] sm:$0xff] }
0x1533   :  { %v2003_v2 = vpop.xlane.xlu1 %2002  ;;  %v2000_v62 = vpop.xlane.xlu0 %1999 }
0x1534   :  { %3221 = vpow2.f32 %v2025_v56  ;;  %v2017_v7 = vsub.f32 %v1971_v54, %v2003_v2  ;;  %v2016_v0 = vsub.f32 %v1966_v26, %v2000_v62  ;;  %v3005_v62 = vpack.c.bf16 %v2241_v50, %v2240_v49 }
0x1536   :  { %v2029_v57 = vmul.f32 1.442695, %v2017_v7  ;;  %v2027_v59 = vmul.f32 1.442695, %v2016_v0 }
0x1537   :  { %v2009_v4 = vpop.xlane.xlu1 %2008  ;;  %v2006_v5 = vpop.xlane.xlu0 %2005 }
0x1538   :  { %3223 = vpow2.f32 %v2029_v57  ;;  %v2018_v6 = vsub.f32 %v1976_v55, %v2006_v5  ;;  %v2019_v18 = vsub.f32 %v1981_v58, %v2009_v4 }
0x1539   :  { %v3990_v10 = vpop.eup %3217  ;;  %3225 = vpow2.f32 %v2027_v59 }
0x153a   :  { %v3220_v9 = vpop.eup %3219  ;;  %v2031_v11 = vmul.f32 1.442695, %v2018_v6  ;;  %v2040_v17 = vsel %vm91_vm0, %v3990_v10, 0.0  ;;  %v2033_v40 = vmul.f32 1.442695, %v2019_v18 }
0x153b   :  { %v3103_v22 = vpop.permute.xlu1 %3102  ;;  %2041 = vadd.xlane.f32.xlu0 %v2040_v17  ;;  %v2012_v29 = vpop.xlane.xlu0 %2011  ;;  %v2037_v30 = vsel %vm91_vm0, %v3220_v9, 0.0 }
0x153c   :  { %v3105_v34 = vunpack.i.h.bf16 %v3103_v22  ;;  %v3104_v27 = vunpack.i.l.bf16 %v3103_v22  ;;  %v2020_v16 = vsub.f32 %v1986_v8, %v2012_v29  ;;  %2038 = vadd.xlane.f32.xlu1 %v2037_v30  ;;  %3227 = vpow2.f32 %v2031_v11 }
0x153e   :  { %v3995_v19 = vpop.eup %3221  ;;  %v2985_v25 = vpack.c.bf16 %v3105_v34, %v3104_v27  ;;  %v2035_v48 = vmul.f32 1.442695, %v2020_v16 }
0x153f   :  { %v2043_v60 = vsel %vm91_vm0, %v3995_v19, 0.0 }
0x1540   :  { %3229 = vpow2.f32 %v2035_v48  ;;  %2986 = vmatprep.subr.bf16.mxu1 %v2985_v25  ;;  %2044 = vadd.xlane.f32.xlu1 %v2043_v60 }
0x1541   :  { %2988 = vmatpush3.bf16.msra.mxu1 %v2985_v25  ;;  %3231 = vpow2.f32 %v2033_v40  ;;  %v79_v25 = vld [vmem:[%s4101_s1 + $0x202] ss:$0 sm:$0xff] }
0x1542   :  { %v3999_v36 = vpop.eup %3223 }
0x1543   :  { %v4001_v52 = vpop.eup %3225  ;;  %v2049_v3 = vsel %vm91_vm0, %v3999_v36, 0.0 }
0x1544   :  { %2050 = vadd.xlane.f32.xlu1 %v2049_v3  ;;  %v2046_v41 = vsel %vm91_vm0, %v4001_v52, 0.0 }
0x1545   :  { %2047 = vadd.xlane.f32.xlu0 %v2046_v41 }
0x1546   :  { %v4007_v13 = vpop.eup %3227 }
0x1547   :  { %v2052_v39 = vsel %vm91_vm0, %v4007_v13, 0.0 }
0x1549   :  { %2053 = vadd.xlane.f32.xlu0 %v2052_v39 }
0x154a   :  { %v4011_v26 = vpop.eup %3229 }
0x154b   :  { %v2058_v15 = vsel %vm91_vm0, %v4011_v26, 0.0  ;;  %v4015_v42 = vpop.eup %3231 }
0x154c   :  { %v2055_v31 = vsel %vm91_vm0, %v4015_v42, 0.0 }
0x154d   :  { %2059 = vadd.xlane.f32.xlu0 %v2058_v15 }
0x1551   :  { %2056 = vadd.xlane.f32.xlu0 %v2055_v31 }
0x1555   :  { %3112 = vrot.lane.b32.xlu1 %v3111_v23, %s3268_s23 }
0x1559   :  { %3117 = vrot.lane.b32.xlu1 %v3116_v35, %s3268_s23 }
0x1567   :  { %3107 = vrot.lane.b32.xlu0 %v3106_v12, %s3268_s23 }
0x15c8   :  { %v2042_v55 = vpop.xlane.xlu0 %2041 }
0x15c9   :  { %v2039_v54 = vpop.xlane.xlu1 %2038 }
0x15ca   :  { %3233 = vrcp.f32 %v2039_v54 }
0x15cb   :  { %3235 = vrcp.f32 %v2042_v55 }
0x15cd   :  { %v2045_v37 = vpop.xlane.xlu1 %2044 }
0x15ce   :  { %3237 = vrcp.f32 %v2045_v37 }
0x15d1   :  { %v2051_v20 = vpop.xlane.xlu1 %2050 }
0x15d2   :  { %v2048_v43 = vpop.xlane.xlu0 %2047 }
0x15d3   :  { %3239 = vrcp.f32 %v2048_v43 }
0x15d4   :  { %v3234_v44 = vpop.eup %3233  ;;  %3241 = vrcp.f32 %v2051_v20 }
0x15d5   :  { %v2069_v45 = vmul.f32 %v3234_v44, %v3220_v9  ;;  %v3113_v23 = vpop.permute.xlu1 %3112  ;;  %v3236_v47 = vpop.eup %3235 }
0x15d6   :  { %v2054_v58 = vpop.xlane.xlu0 %2053  ;;  %v3115_v35 = vunpack.i.h.bf16 %v3113_v23  ;;  %v3114_v8 = vunpack.i.l.bf16 %v3113_v23  ;;  %v2070_v2 = vmul.f32 %v3236_v47, %v3990_v10 }
0x15d7   :  { %2721 = vmatprep.mubr.msk.f32.mxu1 %vm91_vm0, %v2069_v45  ;;  %3243 = vrcp.f32 %v2054_v58 }
0x15d8   :  { %v2993_v38 = vpack.c.bf16 %v3115_v35, %v3114_v8  ;;  %v3238_v56 = vpop.eup %3237 }
0x15d9   :  { %v3118_v1 = vpop.permute.xlu1 %3117  ;;  %v2071_v0 = vmul.f32 %v3238_v56, %v3995_v19 }
0x15da   :  { %v2060_v21 = vpop.xlane.xlu0 %2059  ;;  %v3120_v14 = vunpack.i.h.bf16 %v3118_v1  ;;  %v3119_v24 = vunpack.i.l.bf16 %v3118_v1 }
0x15dc   :  { %v2997_v28 = vpack.c.bf16 %v3120_v14, %v3119_v24 }
0x15dd   :  { %v3240_v7 = vpop.eup %3239 }
0x15de   :  { %v2057_v32 = vpop.xlane.xlu0 %2056  ;;  %v3242_v57 = vpop.eup %3241  ;;  %v2072_v59 = vmul.f32 %v3240_v7, %v4001_v52 }
0x15df   :  { %3245 = vrcp.f32 %v2057_v32  ;;  %v2073_v5 = vmul.f32 %v3242_v57, %v3999_v36 }
0x15e0   :  { %3247 = vrcp.f32 %v2060_v21 }
0x15e1   :  { %v3244_v4 = vpop.eup %3243 }
0x15e2   :  { %v3108_v33 = vpop.permute.xlu0 %3107  ;;  %v2074_v10 = vmul.f32 %v3244_v4, %v4007_v13 }
0x15e3   :  { %v3110_v46 = vunpack.i.h.bf16 %v3108_v33  ;;  %v3109_v61 = vunpack.i.l.bf16 %v3108_v33 }
0x15e5   :  { %v2989_v12 = vpack.c.bf16 %v3110_v46, %v3109_v61 }
0x15e7   :  { %2990 = vmatprep.subr.bf16.mxu1 %v2989_v12 }
0x15e8   :  { %2992 = vmatpush3.bf16.msra.mxu1 %v2989_v12 }
0x15e9   :  { %2994 = vmatprep.subr.bf16.mxu1 %v2993_v38  ;;  %v3246_v6 = vpop.eup %3245 }
0x15ea   :  { %v3248_v9 = vpop.eup %3247  ;;  %v2075_v11 = vmul.f32 %v3246_v6, %v4015_v42 }
0x15eb   :  { %v2076_v17 = vmul.f32 %v3248_v9, %v4011_v26 }
0x15ec   :  { %2996 = vmatpush3.bf16.msra.mxu1 %v2993_v38 }
0x15ed   :  { %2998 = vmatprep.subr.bf16.mxu1 %v2997_v28 }
0x15f0   :  { %3000 = vmatpush3.bf16.msra.mxu1 %v2997_v28 }
0x15f1   :  { %3002 = vmatprep.subr.bf16.mxu1 %v3001_v63 }
0x15f3   :  { %2722 = vmatmul.mubr.msk.f32.vlgmr.msra.gmra.mrb[48].mxu1 %vm91_vm0, %v2070_v2 }
0x15f4   :  { %2724 = vmatprep.mubr.msk.f32.mxu1 %vm91_vm0, %v2071_v0  ;;  %3004 = vmatpush3.bf16.msra.mxu1 %v3001_v63 }
0x15f5   :  { %3006 = vmatprep.subr.bf16.mxu1 %v3005_v62 }
0x15f7   :  { %2725 = vmatmul.mubr.msk.f32.gmra.mrb[50].mxu1 %vm91_vm0, %v2072_v59 }
0x15f8   :  { %2727 = vmatprep.mubr.msk.f32.mxu1 %vm91_vm0, %v2073_v5  ;;  %3008 = vmatpush3.bf16.msra.mxu1 %v3005_v62 }
0x15fb   :  { %2728 = vmatmul.mubr.msk.f32.gmra.mrb[52].mxu1 %vm91_vm0, %v2074_v10 }
0x15fc   :  { %2730 = vmatprep.mubr.msk.f32.mxu1 %vm91_vm0, %v2075_v11 }
0x15ff   :  { %2731 = vmatmul.mubr.msk.f32.gmra.mrb[54].mxu1 %vm91_vm0, %v2076_v17 }
0x16c6   :  { %v2723_v18 = vpop.f32.mrb[48].mxu1 }
0x16c7   :  { %v2199_v22 = vpop.f32.mrb[49].mxu1 }
0x16c8   :  { %2741 = vmatprep.mubr.msk.f32.mxu1 %vm338_vm1, %v2199_v22 }
0x16c9   :  { %2742 = vmatmul.mubr.msk.f32.vlgmr.msra.gmra.mrb[32].mxu1 %vm338_vm1, %v2723_v18 }
0x16ca   :  { %v2726_v29 = vpop.f32.mrb[50].mxu1 }
0x16cb   :  { %v2209_v30 = vpop.f32.mrb[51].mxu1 }
0x16cc   :  { %2744 = vmatprep.mubr.msk.f32.mxu1 %vm338_vm1, %v2209_v30 }
0x16cd   :  { %2745 = vmatmul.mubr.msk.f32.gmra.mrb[34].mxu1 %vm338_vm1, %v2726_v29 }
0x16ce   :  { %v2729_v34 = vpop.f32.mrb[52].mxu1 }
0x16cf   :  { %v2219_v27 = vpop.f32.mrb[53].mxu1 }
0x16d0   :  { %2747 = vmatprep.mubr.msk.f32.mxu1 %vm338_vm1, %v2219_v27 }
0x16d1   :  { %2748 = vmatmul.mubr.msk.f32.gmra.mrb[36].mxu1 %vm338_vm1, %v2729_v34 }
0x16d2   :  { %v2732_v16 = vpop.f32.mrb[54].mxu1 }
0x16d3   :  { %v2229_v19 = vpop.f32.mrb[55].mxu1 }
0x16d4   :  { %2750 = vmatprep.mubr.msk.f32.mxu1 %vm338_vm1, %v2229_v19 }
0x16d5   :  { %2751 = vmatmul.mubr.msk.f32.gmra.mrb[38].mxu1 %vm338_vm1, %v2732_v16 }
0x179c   :  { %v2743_v48 = vpop.f32.mrb[32].mxu1 }
0x179d   :  { %v3025_v40 = vadd.f32 %v2743_v48, %v79_v25  ;;  %v2332_v60 = vpop.f32.mrb[33].mxu1 }
0x179e   :  { %v3026_v36 = vadd.f32 %v2332_v60, %v79_v25 }
0x179f   :  { %v2380_v52 = vmul.f32 0.5, %v3025_v40 }
0x17a0   :  { %v2379_v3 = vmul.f32 0.5, %v3026_v36  ;;  %v2746_v41 = vpop.f32.mrb[34].mxu1 }
0x17a1   :  { %3249 = vtanh.f32 %v2380_v52  ;;  %v3027_v13 = vadd.f32 %v2746_v41, %v79_v25  ;;  %v2342_v39 = vpop.f32.mrb[35].mxu1 }
0x17a2   :  { %3251 = vtanh.f32 %v2379_v3  ;;  %v3028_v26 = vadd.f32 %v2342_v39, %v79_v25 }
0x17a3   :  { %v2382_v15 = vmul.f32 0.5, %v3027_v13 }
0x17a4   :  { %v2381_v42 = vmul.f32 0.5, %v3028_v26  ;;  %v2749_v31 = vpop.f32.mrb[36].mxu1 }
0x17a5   :  { %3253 = vtanh.f32 %v2382_v15  ;;  %v3029_v54 = vadd.f32 %v2749_v31, %v79_v25  ;;  %v2352_v55 = vpop.f32.mrb[37].mxu1 }
0x17a6   :  { %3255 = vtanh.f32 %v2381_v42  ;;  %v3030_v37 = vadd.f32 %v2352_v55, %v79_v25 }
0x17a7   :  { %v2384_v43 = vmul.f32 0.5, %v3029_v54 }
0x17a8   :  { %v2383_v44 = vmul.f32 0.5, %v3030_v37  ;;  %v2752_v45 = vpop.f32.mrb[38].mxu1 }
0x17a9   :  { %3257 = vtanh.f32 %v2384_v43  ;;  %v3031_v58 = vadd.f32 %v2752_v45, %v79_v25  ;;  %v2362_v20 = vpop.f32.mrb[39].mxu1 }
0x17aa   :  { %3259 = vtanh.f32 %v2383_v44  ;;  %v3032_v21 = vadd.f32 %v2362_v20, %v79_v25 }
0x17ab   :  { %v3250_v23 = vpop.eup %3249  ;;  %v2386_v32 = vmul.f32 0.5, %v3031_v58 }
0x17ac   :  { %v3252_v33 = vpop.eup %3251  ;;  %v2396_v35 = vadd.f32 1.0, %v3250_v23  ;;  %v2385_v8 = vmul.f32 0.5, %v3032_v21 }
0x17ad   :  { %v2395_v46 = vadd.f32 1.0, %v3252_v33  ;;  %3261 = vtanh.f32 %v2386_v32 }
0x17ae   :  { %v2404_v61 = vmul.f32 0.5, %v2396_v35  ;;  %3263 = vtanh.f32 %v2385_v8 }
0x17af   :  { %v3254_v1 = vpop.eup %3253  ;;  %v2403_v12 = vmul.f32 0.5, %v2395_v46 }
0x17b0   :  { %v3256_v38 = vpop.eup %3255  ;;  %2413 = vst.msk [vmem:[%s4103_s2 + $0x8] sm:$0xff] %vm2411_vm4, %v2404_v61  ;;  %v2398_v14 = vadd.f32 1.0, %v3254_v1 }
0x17b1   :  { %2412 = vst.msk [vmem:[%s4103_s2] sm:$0xff] %vm2411_vm4, %v2403_v12  ;;  %v2397_v24 = vadd.f32 1.0, %v3256_v38 }
0x17b2   :  { %v2406_v51 = vmul.f32 0.5, %v2398_v14 }
0x17b3   :  { %v3258_v53 = vpop.eup %3257  ;;  %v2405_v28 = vmul.f32 0.5, %v2397_v24 }
0x17b4   :  { %v3260_v63 = vpop.eup %3259  ;;  %2415 = vst.msk [vmem:[%s4103_s2 + $0x18] sm:$0xff] %vm2411_vm4, %v2406_v51  ;;  %v2400_v47 = vadd.f32 1.0, %v3258_v53 }
0x17b5   :  { %2414 = vst.msk [vmem:[%s4103_s2 + $0x10] sm:$0xff] %vm2411_vm4, %v2405_v28  ;;  %v2399_v49 = vadd.f32 1.0, %v3260_v63 }
0x17b6   :  { %v2408_v50 = vmul.f32 0.5, %v2400_v47 }
0x17b7   :  { %v3262_v56 = vpop.eup %3261  ;;  %v2407_v2 = vmul.f32 0.5, %v2399_v49 }
0x17b8   :  { %v3264_v62 = vpop.eup %3263  ;;  %2417 = vst.msk [vmem:[%s4103_s2 + $0x28] sm:$0xff] %vm2411_vm4, %v2408_v50  ;;  %v2402_v7 = vadd.f32 1.0, %v3262_v56 }
0x17b9   :  { %2416 = vst.msk [vmem:[%s4103_s2 + $0x20] sm:$0xff] %vm2411_vm4, %v2407_v2  ;;  %v2401_v0 = vadd.f32 1.0, %v3264_v62 }
0x17ba   :  { %v2410_v57 = vmul.f32 0.5, %v2402_v7 }
0x17bb   :  { %v2409_v59 = vmul.f32 0.5, %v2401_v0 }
0x17bc   :  { %2419 = vst.msk [vmem:[%s4103_s2 + $0x38] sm:$0xff] %vm2411_vm4, %v2410_v57 }
0x17bd   :  { %2418 = vst.msk [vmem:[%s4103_s2 + $0x30] sm:$0xff] %vm2411_vm4, %v2409_v59 }

</bundles_post_ra>
